<compile_context>
chip_gen: v7x
topology: tpu7x:2x2x1
jax: 0.10.0
libtpu: 0.0.40
codegen_flags: <defaults>
</compile_context>

<pallas_src>
import functools

import jax
import jax.numpy as jnp
from jax import lax
from jax.experimental import pallas as pl
from jax.experimental.pallas import tpu as pltpu

LANE = 128


def _round_up(x, m):
    return (x + m - 1) // m * m


# ------------------------------ kernel --------------------------------------


def _bottleneck_kernel(a_ref, b_ref, w1_ref, b1_ref, w2_ref, b2_ref,
                       w3_ref, b3_ref, o_ref, xband_ref, acc_ref,
                       *, tile_h, H, W, Wp, mxu_dtype):
    # a_ref : (1, tile_h, Wp, Cin_p)  padded-x rows [i*tile_h, (i+1)*tile_h)
    # b_ref : (1, 2, Wp, Cin_p)       2 halo rows [(i+1)*tile_h, (i+1)*tile_h+2)
    # w*_ref: BN-scale-folded conv weights (mxu dtype); b*_ref: (1, C) f32 bias
    # o_ref : (1, tile_h, W, Cout_p) f32
    # xband_ref: VMEM (tile_h+2, Wp, Cin_p) scratch; acc_ref: VMEM (tile_h*W, Cp) f32
    i = pl.program_id(1)
    row0 = i * tile_h
    hb = tile_h + 2
    Cin_p = a_ref.shape[-1]
    Cp = w1_ref.shape[-1]
    Cout_p = w3_ref.shape[-1]

    # ---- assemble the (tile_h + 2)-row input band (tile rows + halo rows) ---
    xband_ref[0:tile_h] = a_ref[0]
    xband_ref[tile_h:hb] = b_ref[0]
    xband = xband_ref[...]

    # ---- conv1 (1x1) + bn1 + relu (BN scale folded into w1) -----------------
    h1 = jnp.dot(xband.reshape(hb * Wp, Cin_p), w1_ref[...],
                 preferred_element_type=jnp.float32)
    h1 = jnp.maximum(h1 + b1_ref[...], 0.0).reshape(hb, Wp, Cp)

    # conv2 expects ZEROS at its padding positions; conv1 applied to the
    # zero-padded border gives relu(bias) != 0, so mask border / out-of-image
    # rows (this also handles the H-divisibility padding -> no tile asserts).
    rr = lax.broadcasted_iota(jnp.int32, (hb, Wp, Cp), 0) + row0
    cc = lax.broadcasted_iota(jnp.int32, (hb, Wp, Cp), 1)
    valid = (rr >= 1) & (rr <= H) & (cc >= 1) & (cc <= W)
    h1 = jnp.where(valid, h1, 0.0).astype(mxu_dtype)

    # ---- conv2 (3x3, stride 1, pad 1) + bn2 + relu ---------------------------
    # 9 unit-stride tap matmuls accumulated into a f32 VMEM scratch.
    for kh in range(3):
        for kw in range(3):
            patch = h1[kh:kh + tile_h, kw:kw + W, :].reshape(tile_h * W, Cp)
            tap = jnp.dot(patch, w2_ref[kh, kw],
                          preferred_element_type=jnp.float32)
            if kh == 0 and kw == 0:
                acc_ref[...] = tap
            else:
                acc_ref[...] += tap
    h2 = jnp.maximum(acc_ref[...] + b2_ref[...], 0.0).astype(mxu_dtype)

    # ---- conv3 (1x1) + bn3 + identity residual + relu ------------------------
    y = jnp.dot(h2, w3_ref[...], preferred_element_type=jnp.float32)
    y = y + b3_ref[...]
    res = xband[1:1 + tile_h, 1:1 + W, :].astype(jnp.float32)
    y = y + res.reshape(tile_h * W, Cout_p)
    y = jnp.maximum(y, 0.0)
    o_ref[...] = y.reshape(1, tile_h, W, Cout_p).astype(o_ref.dtype)


# ------------------------------ wrapper --------------------------------------


def _fold_bn(gamma, beta, mean, var, eps=1e-5):
    scale = gamma / jnp.sqrt(var + eps)
    bias = beta - mean * scale
    return scale, bias


def _pad_to(w, shape):
    out = jnp.zeros(shape, jnp.float32)
    return out.at[tuple(slice(0, s) for s in w.shape)].set(w)


@functools.partial(jax.jit, static_argnames=("stride", "tile_h", "mxu_dtype"))
def bottleneck_forward(x_nchw, params, stride=1, *, tile_h=8,
                       mxu_dtype=jnp.float32):
    """Fused Bottleneck forward (downsample=None -> identity residual)."""
    N, Cin, H, W = x_nchw.shape
    planes = params["w1"].shape[1]
    out_c = params["w3"].shape[1]
    if tile_h < 2 or tile_h % 2:
        raise ValueError("tile_h must be an even integer >= 2")
    if stride != 1 or out_c != Cin:
        # TODO(synk): stride>1 / non-None downsample (a 1x1-conv+BN projection
        # of the residual) is not implemented; identity residual requires
        # inplanes == planes * expansion, exactly like the PyTorch module.
        raise NotImplementedError(
            "only stride=1 with identity residual (inplanes == planes*4)")

    # Fold BN running stats into conv weights (scale) + per-channel f32 bias.
    s1, b1 = _fold_bn(*params["bn1"])
    s2, b2 = _fold_bn(*params["bn2"])
    s3, b3 = _fold_bn(*params["bn3"])
    w1 = params["w1"] * s1[None, :]
    w2 = params["w2"] * s2[None, None, None, :]
    w3 = params["w3"] * s3[None, :]

    # Pad channels up to the 128-lane width (lane-dense MXU tiles and stores).
    Cin_p = _round_up(Cin, LANE)
    Cp = _round_up(planes, LANE)
    Cout_p = _round_up(out_c, LANE)
    w1p = _pad_to(w1, (Cin_p, Cp)).astype(mxu_dtype)
    w2p = _pad_to(w2, (3, 3, Cp, Cp)).astype(mxu_dtype)
    w3p = _pad_to(w3, (Cp, Cout_p)).astype(mxu_dtype)
    b1p = _pad_to(b1[None, :], (1, Cp))
    b2p = _pad_to(b2[None, :], (1, Cp))
    b3p = _pad_to(b3[None, :], (1, Cout_p))

    # NHWC + zero padding: +1 halo ring for the 3x3 conv, H rounded up to a
    # tile_h multiple (handled by in-kernel masking), W+2 rounded up to a
    # sublane multiple so the in-kernel reshapes stay tile-aligned.
    # TODO(synk): keep the surrounding model NHWC to drop these transposes.
    x = jnp.transpose(x_nchw, (0, 2, 3, 1))
    H_pad = _round_up(H, tile_h)
    Hp = H_pad + tile_h                      # room for the bottom halo fetch
    Wp = _round_up(W + 2, 8)
    xp = jnp.zeros((N, Hp, Wp, Cin_p), mxu_dtype)
    xp = xp.at[:, 1:1 + H, 1:1 + W, :Cin].set(x.astype(mxu_dtype))

    n_row_tiles = H_pad // tile_h
    kernel = functools.partial(_bottleneck_kernel, tile_h=tile_h, H=H, W=W,
                               Wp=Wp, mxu_dtype=mxu_dtype)
    out = pl.pallas_call(
        kernel,
        out_shape=jax.ShapeDtypeStruct((N, H_pad, W, Cout_p), jnp.float32),
        grid_spec=pltpu.PrefetchScalarGridSpec(
            num_scalar_prefetch=0,
            grid=(N, n_row_tiles),
            in_specs=[
                # tile_h main rows of the band
                pl.BlockSpec((1, tile_h, Wp, Cin_p),
                             lambda n, i: (n, i, 0, 0)),
                # 2 halo rows just below the band (same array, 2-row blocks)
                pl.BlockSpec((1, 2, Wp, Cin_p),
                             lambda n, i: (n, (i + 1) * (tile_h // 2), 0, 0)),
                pl.BlockSpec((Cin_p, Cp), lambda n, i: (0, 0)),
                pl.BlockSpec((1, Cp), lambda n, i: (0, 0)),
                pl.BlockSpec((3, 3, Cp, Cp), lambda n, i: (0, 0, 0, 0)),
                pl.BlockSpec((1, Cp), lambda n, i: (0, 0)),
                pl.BlockSpec((Cp, Cout_p), lambda n, i: (0, 0)),
                pl.BlockSpec((1, Cout_p), lambda n, i: (0, 0)),
            ],
            out_specs=pl.BlockSpec((1, tile_h, W, Cout_p),
                                   lambda n, i: (n, i, 0, 0)),
            scratch_shapes=[
                pltpu.VMEM((tile_h + 2, Wp, Cin_p), mxu_dtype),   # input band
                pltpu.VMEM((tile_h * W, Cp), jnp.float32),        # conv2 acc
            ],
        ),
        compiler_params=pltpu.CompilerParams(
            dimension_semantics=("parallel", "parallel"),
            vmem_limit_bytes=32 * 1024 * 1024,
        ),
    )(xp, xp, w1p, b1p, w2p, b2p, w3p, b3p)

    out = out[:, :H, :, :out_c]
    return jnp.transpose(out, (0, 3, 1, 2)).astype(x_nchw.dtype)


# ------------------------------ reference ------------------------------------


def bottleneck_reference(x_nchw, params, stride=1):
    x = jnp.transpose(x_nchw, (0, 2, 3, 1))

    def conv(inp, w_hwio, strd, pad):
        return lax.conv_general_dilated(
            inp, w_hwio, window_strides=(strd, strd),
            padding=[(pad, pad), (pad, pad)],
            dimension_numbers=("NHWC", "HWIO", "NHWC"))

    def bn(y, gamma, beta, mean, var, eps=1e-5):
        return (y - mean) / jnp.sqrt(var + eps) * gamma + beta

    Cin = x.shape[-1]
    planes = params["w1"].shape[1]
    w1 = params["w1"].reshape(1, 1, Cin, planes)
    w3 = params["w3"].reshape(1, 1, planes, params["w3"].shape[1])

    out = jax.nn.relu(bn(conv(x, w1, 1, 0), *params["bn1"]))
    out = jax.nn.relu(bn(conv(out, params["w2"], stride, 1), *params["bn2"]))
    out = bn(conv(out, w3, 1, 0), *params["bn3"])
    out = jax.nn.relu(out + x)
    return jnp.transpose(out, (0, 3, 1, 2))


# ------------------------------ main ------------------------------------------

if __name__ == "__main__":
    key = jax.random.PRNGKey(0)

    def bn_init(k, c):
        k1, k2, k3, k4 = jax.random.split(k, 4)
        gamma = jax.random.uniform(k1, (c,), jnp.float32, 0.5, 1.5)
        beta = 0.1 * jax.random.normal(k2, (c,), jnp.float32)
        mean = 0.1 * jax.random.normal(k3, (c,), jnp.float32)
        var = jax.random.uniform(k4, (c,), jnp.float32, 0.5, 1.5)
        return (gamma, beta, mean, var)

    def make_params(k, inplanes, planes):
        ks = jax.random.split(k, 6)
        return {
            "w1": 0.1 * jax.random.normal(ks[0], (inplanes, planes), jnp.float32),
            "w2": 0.1 * jax.random.normal(ks[1], (3, 3, planes, planes), jnp.float32),
            "w3": 0.1 * jax.random.normal(ks[2], (planes, planes * 4), jnp.float32),
            "bn1": bn_init(ks[3], planes),
            "bn2": bn_init(ks[4], planes),
            "bn3": bn_init(ks[5], planes * 4),
        }

    kx, kp, kx2, kp2 = jax.random.split(key, 4)

    # Config A: N=2, inplanes=16, planes=4, 16x16 spatial -> grid (2 batches x
    # 2 row-bands), exercises the halo handoff between bands.
    N, inplanes, planes, H, W = 2, 16, 4, 16, 16
    x = jax.random.normal(kx, (N, inplanes, H, W), jnp.float32)
    params = make_params(kp, inplanes, planes)

    out = jax.block_until_ready(bottleneck_forward(x, params))
    ref = jax.block_until_ready(bottleneck_reference(x, params))
    assert out.shape == (N, planes * 4, H, W), out.shape
    assert jnp.allclose(out, ref, rtol=1e-4, atol=1e-4), (
        float(jnp.max(jnp.abs(out - ref))))

    # bf16 MXU-feed path (v6e/v7x); f32 accumulation + f32 epilogue.
    out_bf = jax.block_until_ready(
        bottleneck_forward(x, params, mxu_dtype=jnp.bfloat16))
    assert jnp.allclose(out_bf, ref, rtol=5e-2, atol=5e-2), (
        float(jnp.max(jnp.abs(out_bf - ref))))

    # Config B: ragged spatial size (H not a multiple of tile_h) exercises the
    # padding + masking path that replaced the old divisibility assert.
    N2, inplanes2, planes2, H2, W2 = 1, 16, 4, 10, 12
    x2 = jax.random.normal(kx2, (N2, inplanes2, H2, W2), jnp.float32)
    params2 = make_params(kp2, inplanes2, planes2)
    out2 = jax.block_until_ready(bottleneck_forward(x2, params2))
    ref2 = jax.block_until_ready(bottleneck_reference(x2, params2))
    assert out2.shape == (N2, planes2 * 4, H2, W2), out2.shape
    assert jnp.allclose(out2, ref2, rtol=1e-4, atol=1e-4), (
        float(jnp.max(jnp.abs(out2 - ref2))))

    print("KERNEL_OK")
</pallas_src>

<mosaic_0001>
module attributes {stable_mosaic.version = 11 : i64} {
  func.func @_bottleneck_kernel(%arg0: i32, %arg1: i32, %arg2: memref<1x8x24x128xf32, #tpu.memory_space<vmem>>, %arg3: memref<1x2x24x128xf32, #tpu.memory_space<vmem>>, %arg4: memref<128x128xf32, #tpu.memory_space<vmem>>, %arg5: memref<1x128xf32, #tpu.memory_space<vmem>>, %arg6: memref<3x3x128x128xf32, #tpu.memory_space<vmem>>, %arg7: memref<1x128xf32, #tpu.memory_space<vmem>>, %arg8: memref<128x128xf32, #tpu.memory_space<vmem>>, %arg9: memref<1x128xf32, #tpu.memory_space<vmem>>, %arg10: memref<1x8x16x128xf32, #tpu.memory_space<vmem>>, %arg11: memref<10x24x128xf32, #tpu.memory_space<vmem>>, %arg12: memref<128x128xf32, #tpu.memory_space<vmem>>) attributes {dimension_semantics = [#tpu.dimension_semantics<parallel>, #tpu.dimension_semantics<parallel>], iteration_bounds = array<i64: 2, 2>, scalar_prefetch = 0 : i64, scratch_operands = 2 : i64, tpu.core_type = #tpu.core_type<tc>, window_params = [{transform_indices = @transform_0, window_bounds = array<i64: 1, 8, 24, 128>}, {transform_indices = @transform_1, window_bounds = array<i64: 1, 2, 24, 128>}, {pipeline_mode = #tpu.pipeline_mode<synchronous>, transform_indices = @transform_2, window_bounds = array<i64: 128, 128>}, {pipeline_mode = #tpu.pipeline_mode<synchronous>, transform_indices = @transform_3, window_bounds = array<i64: 1, 128>}, {pipeline_mode = #tpu.pipeline_mode<synchronous>, transform_indices = @transform_4, window_bounds = array<i64: 3, 3, 128, 128>}, {pipeline_mode = #tpu.pipeline_mode<synchronous>, transform_indices = @transform_5, window_bounds = array<i64: 1, 128>}, {pipeline_mode = #tpu.pipeline_mode<synchronous>, transform_indices = @transform_6, window_bounds = array<i64: 128, 128>}, {pipeline_mode = #tpu.pipeline_mode<synchronous>, transform_indices = @transform_7, window_bounds = array<i64: 1, 128>}, {transform_indices = @transform_8, window_bounds = array<i64: 1, 8, 16, 128>}]} {
    %c8_i32 = arith.constant 8 : i32
    %0 = arith.muli %arg1, %c8_i32 : i32
    %c0 = arith.constant 0 : index
    %c0_0 = arith.constant 0 : index
    %c0_1 = arith.constant 0 : index
    %c0_2 = arith.constant 0 : index
    %1 = vector.load %arg2[%c0, %c0_0, %c0_1, %c0_2] : memref<1x8x24x128xf32, #tpu.memory_space<vmem>>, vector<1x8x24x128xf32>
    %2 = vector.shape_cast %1 : vector<1x8x24x128xf32> to vector<8x24x128xf32>
    %c0_3 = arith.constant 0 : index
    %c0_4 = arith.constant 0 : index
    %c0_5 = arith.constant 0 : index
    %3 = vector.load %arg11[%c0_3, %c0_4, %c0_5] : memref<10x24x128xf32, #tpu.memory_space<vmem>>, vector<8x24x128xf32>
    tpu.vector_store %arg11[%c0_3, %c0_4, %c0_5], %2 {strides = array<i32>} : memref<10x24x128xf32, #tpu.memory_space<vmem>>, vector<8x24x128xf32>,
    %c0_6 = arith.constant 0 : index
    %c0_7 = arith.constant 0 : index
    %c0_8 = arith.constant 0 : index
    %c0_9 = arith.constant 0 : index
    %4 = vector.load %arg3[%c0_6, %c0_7, %c0_8, %c0_9] : memref<1x2x24x128xf32, #tpu.memory_space<vmem>>, vector<1x2x24x128xf32>
    %5 = vector.shape_cast %4 : vector<1x2x24x128xf32> to vector<2x24x128xf32>
    %c8 = arith.constant 8 : index
    %c0_10 = arith.constant 0 : index
    %c0_11 = arith.constant 0 : index
    %6 = vector.load %arg11[%c8, %c0_10, %c0_11] : memref<10x24x128xf32, #tpu.memory_space<vmem>>, vector<2x24x128xf32>
    tpu.vector_store %arg11[%c8, %c0_10, %c0_11], %5 {strides = array<i32>} : memref<10x24x128xf32, #tpu.memory_space<vmem>>, vector<2x24x128xf32>,
    %c0_12 = arith.constant 0 : index
    %c0_13 = arith.constant 0 : index
    %c0_14 = arith.constant 0 : index
    %7 = vector.load %arg11[%c0_12, %c0_13, %c0_14] : memref<10x24x128xf32, #tpu.memory_space<vmem>>, vector<10x24x128xf32>
    %8 = vector.shape_cast %7 : vector<10x24x128xf32> to vector<240x128xf32>
    %c0_15 = arith.constant 0 : index
    %c0_16 = arith.constant 0 : index
    %9 = vector.load %arg4[%c0_15, %c0_16] : memref<128x128xf32, #tpu.memory_space<vmem>>, vector<128x128xf32>
    %cst = arith.constant dense<0.000000e+00> : vector<240x128xf32>
    %10 = tpu.matmul %8, %9, %cst {dimension_numbers = #tpu.dot_dimension_numbers<[1], [0], [0], [1], [0, 0, 1, 1], [], []>} : vector<240x128xf32>, vector<128x128xf32>, vector<240x128xf32> -> vector<240x128xf32>
    %c0_17 = arith.constant 0 : index
    %c0_18 = arith.constant 0 : index
    %11 = vector.load %arg5[%c0_17, %c0_18] : memref<1x128xf32, #tpu.memory_space<vmem>>, vector<1x128xf32>
    %12 = vector.broadcast %11 : vector<1x128xf32> to vector<240x128xf32>
    %13 = arith.addf %10, %12 : vector<240x128xf32>
    %cst_19 = arith.constant 0.000000e+00 : f32
    %14 = vector.broadcast %cst_19 : f32 to vector<240x128xf32>
    %15 = arith.maximumf %13, %14 : vector<240x128xf32>
    %16 = vector.shape_cast %15 : vector<240x128xf32> to vector<10x24x128xf32>
    %17 = tpu.iota {dimensions = array<i32: 0>} : vector<10x24x128xi32>
    %18 = vector.broadcast %0 : i32 to vector<10x24x128xi32>
    %19 = arith.addi %17, %18 : vector<10x24x128xi32>
    %20 = tpu.iota {dimensions = array<i32: 1>} : vector<10x24x128xi32>
    %c1_i32 = arith.constant 1 : i32
    %21 = vector.broadcast %c1_i32 : i32 to vector<10x24x128xi32>
    %22 = arith.cmpi sge, %19, %21 : vector<10x24x128xi32>
    %c16_i32 = arith.constant 16 : i32
    %23 = vector.broadcast %c16_i32 : i32 to vector<10x24x128xi32>
    %24 = arith.cmpi sle, %19, %23 : vector<10x24x128xi32>
    %25 = arith.andi %22, %24 : vector<10x24x128xi1>
    %c1_i32_20 = arith.constant 1 : i32
    %26 = vector.broadcast %c1_i32_20 : i32 to vector<10x24x128xi32>
    %27 = arith.cmpi sge, %20, %26 : vector<10x24x128xi32>
    %28 = arith.andi %25, %27 : vector<10x24x128xi1>
    %c16_i32_21 = arith.constant 16 : i32
    %29 = vector.broadcast %c16_i32_21 : i32 to vector<10x24x128xi32>
    %30 = arith.cmpi sle, %20, %29 : vector<10x24x128xi32>
    %31 = arith.andi %28, %30 : vector<10x24x128xi1>
    %cst_22 = arith.constant 0.000000e+00 : f32
    %32 = vector.broadcast %cst_22 : f32 to vector<10x24x128xf32>
    %33 = arith.select %31, %16, %32 : vector<10x24x128xi1>, vector<10x24x128xf32>
    %34 = vector.extract_strided_slice %33 {offsets = [0, 0, 0], sizes = [8, 16, 128], strides = [1, 1, 1]} : vector<10x24x128xf32> to vector<8x16x128xf32>
    %35 = vector.shape_cast %34 : vector<8x16x128xf32> to vector<128x128xf32>
    %c0_23 = arith.constant 0 : index
    %c0_24 = arith.constant 0 : index
    %c0_25 = arith.constant 0 : index
    %c0_26 = arith.constant 0 : index
    %36 = vector.load %arg6[%c0_23, %c0_24, %c0_25, %c0_26] : memref<3x3x128x128xf32, #tpu.memory_space<vmem>>, vector<1x1x128x128xf32>
    %37 = vector.shape_cast %36 : vector<1x1x128x128xf32> to vector<128x128xf32>
    %cst_27 = arith.constant dense<0.000000e+00> : vector<128x128xf32>
    %38 = tpu.matmul %35, %37, %cst_27 {dimension_numbers = #tpu.dot_dimension_numbers<[1], [0], [0], [1], [0, 0, 1, 1], [], []>} : vector<128x128xf32>, vector<128x128xf32>, vector<128x128xf32> -> vector<128x128xf32>
    %c0_28 = arith.constant 0 : index
    %c0_29 = arith.constant 0 : index
    %39 = vector.load %arg12[%c0_28, %c0_29] : memref<128x128xf32, #tpu.memory_space<vmem>>, vector<128x128xf32>
    tpu.vector_store %arg12[%c0_28, %c0_29], %38 {strides = array<i32>} : memref<128x128xf32, #tpu.memory_space<vmem>>, vector<128x128xf32>,
    %40 = vector.extract_strided_slice %33 {offsets = [0, 1, 0], sizes = [8, 16, 128], strides = [1, 1, 1]} : vector<10x24x128xf32> to vector<8x16x128xf32>
    %41 = vector.shape_cast %40 : vector<8x16x128xf32> to vector<128x128xf32>
    %c0_30 = arith.constant 0 : index
    %c1 = arith.constant 1 : index
    %c0_31 = arith.constant 0 : index
    %c0_32 = arith.constant 0 : index
    %42 = vector.load %arg6[%c0_30, %c1, %c0_31, %c0_32] : memref<3x3x128x128xf32, #tpu.memory_space<vmem>>, vector<1x1x128x128xf32>
    %43 = vector.shape_cast %42 : vector<1x1x128x128xf32> to vector<128x128xf32>
    %cst_33 = arith.constant dense<0.000000e+00> : vector<128x128xf32>
    %44 = tpu.matmul %41, %43, %cst_33 {dimension_numbers = #tpu.dot_dimension_numbers<[1], [0], [0], [1], [0, 0, 1, 1], [], []>} : vector<128x128xf32>, vector<128x128xf32>, vector<128x128xf32> -> vector<128x128xf32>
    %c0_34 = arith.constant 0 : index
    %c0_35 = arith.constant 0 : index
    %45 = vector.load %arg12[%c0_34, %c0_35] : memref<128x128xf32, #tpu.memory_space<vmem>>, vector<128x128xf32>
    %46 = arith.addf %45, %44 : vector<128x128xf32>
    %c0_36 = arith.constant 0 : index
    %c0_37 = arith.constant 0 : index
    %47 = vector.load %arg12[%c0_36, %c0_37] : memref<128x128xf32, #tpu.memory_space<vmem>>, vector<128x128xf32>
    tpu.vector_store %arg12[%c0_36, %c0_37], %46 {strides = array<i32>} : memref<128x128xf32, #tpu.memory_space<vmem>>, vector<128x128xf32>,
    %48 = vector.extract_strided_slice %33 {offsets = [0, 2, 0], sizes = [8, 16, 128], strides = [1, 1, 1]} : vector<10x24x128xf32> to vector<8x16x128xf32>
    %49 = vector.shape_cast %48 : vector<8x16x128xf32> to vector<128x128xf32>
    %c0_38 = arith.constant 0 : index
    %c2 = arith.constant 2 : index
    %c0_39 = arith.constant 0 : index
    %c0_40 = arith.constant 0 : index
    %50 = vector.load %arg6[%c0_38, %c2, %c0_39, %c0_40] : memref<3x3x128x128xf32, #tpu.memory_space<vmem>>, vector<1x1x128x128xf32>
    %51 = vector.shape_cast %50 : vector<1x1x128x128xf32> to vector<128x128xf32>
    %cst_41 = arith.constant dense<0.000000e+00> : vector<128x128xf32>
    %52 = tpu.matmul %49, %51, %cst_41 {dimension_numbers = #tpu.dot_dimension_numbers<[1], [0], [0], [1], [0, 0, 1, 1], [], []>} : vector<128x128xf32>, vector<128x128xf32>, vector<128x128xf32> -> vector<128x128xf32>
    %c0_42 = arith.constant 0 : index
    %c0_43 = arith.constant 0 : index
    %53 = vector.load %arg12[%c0_42, %c0_43] : memref<128x128xf32, #tpu.memory_space<vmem>>, vector<128x128xf32>
    %54 = arith.addf %53, %52 : vector<128x128xf32>
    %c0_44 = arith.constant 0 : index
    %c0_45 = arith.constant 0 : index
    %55 = vector.load %arg12[%c0_44, %c0_45] : memref<128x128xf32, #tpu.memory_space<vmem>>, vector<128x128xf32>
    tpu.vector_store %arg12[%c0_44, %c0_45], %54 {strides = array<i32>} : memref<128x128xf32, #tpu.memory_space<vmem>>, vector<128x128xf32>,
    %56 = vector.extract_strided_slice %33 {offsets = [1, 0, 0], sizes = [8, 16, 128], strides = [1, 1, 1]} : vector<10x24x128xf32> to vector<8x16x128xf32>
    %57 = vector.shape_cast %56 : vector<8x16x128xf32> to vector<128x128xf32>
    %c1_46 = arith.constant 1 : index
    %c0_47 = arith.constant 0 : index
    %c0_48 = arith.constant 0 : index
    %c0_49 = arith.constant 0 : index
    %58 = vector.load %arg6[%c1_46, %c0_47, %c0_48, %c0_49] : memref<3x3x128x128xf32, #tpu.memory_space<vmem>>, vector<1x1x128x128xf32>
    %59 = vector.shape_cast %58 : vector<1x1x128x128xf32> to vector<128x128xf32>
    %cst_50 = arith.constant dense<0.000000e+00> : vector<128x128xf32>
    %60 = tpu.matmul %57, %59, %cst_50 {dimension_numbers = #tpu.dot_dimension_numbers<[1], [0], [0], [1], [0, 0, 1, 1], [], []>} : vector<128x128xf32>, vector<128x128xf32>, vector<128x128xf32> -> vector<128x128xf32>
    %c0_51 = arith.constant 0 : index
    %c0_52 = arith.constant 0 : index
    %61 = vector.load %arg12[%c0_51, %c0_52] : memref<128x128xf32, #tpu.memory_space<vmem>>, vector<128x128xf32>
    %62 = arith.addf %61, %60 : vector<128x128xf32>
    %c0_53 = arith.constant 0 : index
    %c0_54 = arith.constant 0 : index
    %63 = vector.load %arg12[%c0_53, %c0_54] : memref<128x128xf32, #tpu.memory_space<vmem>>, vector<128x128xf32>
    tpu.vector_store %arg12[%c0_53, %c0_54], %62 {strides = array<i32>} : memref<128x128xf32, #tpu.memory_space<vmem>>, vector<128x128xf32>,
    %64 = vector.extract_strided_slice %33 {offsets = [1, 1, 0], sizes = [8, 16, 128], strides = [1, 1, 1]} : vector<10x24x128xf32> to vector<8x16x128xf32>
    %65 = vector.shape_cast %64 : vector<8x16x128xf32> to vector<128x128xf32>
    %c1_55 = arith.constant 1 : index
    %c1_56 = arith.constant 1 : index
    %c0_57 = arith.constant 0 : index
    %c0_58 = arith.constant 0 : index
    %66 = vector.load %arg6[%c1_55, %c1_56, %c0_57, %c0_58] : memref<3x3x128x128xf32, #tpu.memory_space<vmem>>, vector<1x1x128x128xf32>
    %67 = vector.shape_cast %66 : vector<1x1x128x128xf32> to vector<128x128xf32>
    %cst_59 = arith.constant dense<0.000000e+00> : vector<128x128xf32>
    %68 = tpu.matmul %65, %67, %cst_59 {dimension_numbers = #tpu.dot_dimension_numbers<[1], [0], [0], [1], [0, 0, 1, 1], [], []>} : vector<128x128xf32>, vector<128x128xf32>, vector<128x128xf32> -> vector<128x128xf32>
    %c0_60 = arith.constant 0 : index
    %c0_61 = arith.constant 0 : index
    %69 = vector.load %arg12[%c0_60, %c0_61] : memref<128x128xf32, #tpu.memory_space<vmem>>, vector<128x128xf32>
    %70 = arith.addf %69, %68 : vector<128x128xf32>
    %c0_62 = arith.constant 0 : index
    %c0_63 = arith.constant 0 : index
    %71 = vector.load %arg12[%c0_62, %c0_63] : memref<128x128xf32, #tpu.memory_space<vmem>>, vector<128x128xf32>
    tpu.vector_store %arg12[%c0_62, %c0_63], %70 {strides = array<i32>} : memref<128x128xf32, #tpu.memory_space<vmem>>, vector<128x128xf32>,
    %72 = vector.extract_strided_slice %33 {offsets = [1, 2, 0], sizes = [8, 16, 128], strides = [1, 1, 1]} : vector<10x24x128xf32> to vector<8x16x128xf32>
    %73 = vector.shape_cast %72 : vector<8x16x128xf32> to vector<128x128xf32>
    %c1_64 = arith.constant 1 : index
    %c2_65 = arith.constant 2 : index
    %c0_66 = arith.constant 0 : index
    %c0_67 = arith.constant 0 : index
    %74 = vector.load %arg6[%c1_64, %c2_65, %c0_66, %c0_67] : memref<3x3x128x128xf32, #tpu.memory_space<vmem>>, vector<1x1x128x128xf32>
    %75 = vector.shape_cast %74 : vector<1x1x128x128xf32> to vector<128x128xf32>
    %cst_68 = arith.constant dense<0.000000e+00> : vector<128x128xf32>
    %76 = tpu.matmul %73, %75, %cst_68 {dimension_numbers = #tpu.dot_dimension_numbers<[1], [0], [0], [1], [0, 0, 1, 1], [], []>} : vector<128x128xf32>, vector<128x128xf32>, vector<128x128xf32> -> vector<128x128xf32>
    %c0_69 = arith.constant 0 : index
    %c0_70 = arith.constant 0 : index
    %77 = vector.load %arg12[%c0_69, %c0_70] : memref<128x128xf32, #tpu.memory_space<vmem>>, vector<128x128xf32>
    %78 = arith.addf %77, %76 : vector<128x128xf32>
    %c0_71 = arith.constant 0 : index
    %c0_72 = arith.constant 0 : index
    %79 = vector.load %arg12[%c0_71, %c0_72] : memref<128x128xf32, #tpu.memory_space<vmem>>, vector<128x128xf32>
    tpu.vector_store %arg12[%c0_71, %c0_72], %78 {strides = array<i32>} : memref<128x128xf32, #tpu.memory_space<vmem>>, vector<128x128xf32>,
    %80 = vector.extract_strided_slice %33 {offsets = [2, 0, 0], sizes = [8, 16, 128], strides = [1, 1, 1]} : vector<10x24x128xf32> to vector<8x16x128xf32>
    %81 = vector.shape_cast %80 : vector<8x16x128xf32> to vector<128x128xf32>
    %c2_73 = arith.constant 2 : index
    %c0_74 = arith.constant 0 : index
    %c0_75 = arith.constant 0 : index
    %c0_76 = arith.constant 0 : index
    %82 = vector.load %arg6[%c2_73, %c0_74, %c0_75, %c0_76] : memref<3x3x128x128xf32, #tpu.memory_space<vmem>>, vector<1x1x128x128xf32>
    %83 = vector.shape_cast %82 : vector<1x1x128x128xf32> to vector<128x128xf32>
    %cst_77 = arith.constant dense<0.000000e+00> : vector<128x128xf32>
    %84 = tpu.matmul %81, %83, %cst_77 {dimension_numbers = #tpu.dot_dimension_numbers<[1], [0], [0], [1], [0, 0, 1, 1], [], []>} : vector<128x128xf32>, vector<128x128xf32>, vector<128x128xf32> -> vector<128x128xf32>
    %c0_78 = arith.constant 0 : index
    %c0_79 = arith.constant 0 : index
    %85 = vector.load %arg12[%c0_78, %c0_79] : memref<128x128xf32, #tpu.memory_space<vmem>>, vector<128x128xf32>
    %86 = arith.addf %85, %84 : vector<128x128xf32>
    %c0_80 = arith.constant 0 : index
    %c0_81 = arith.constant 0 : index
    %87 = vector.load %arg12[%c0_80, %c0_81] : memref<128x128xf32, #tpu.memory_space<vmem>>, vector<128x128xf32>
    tpu.vector_store %arg12[%c0_80, %c0_81], %86 {strides = array<i32>} : memref<128x128xf32, #tpu.memory_space<vmem>>, vector<128x128xf32>,
    %88 = vector.extract_strided_slice %33 {offsets = [2, 1, 0], sizes = [8, 16, 128], strides = [1, 1, 1]} : vector<10x24x128xf32> to vector<8x16x128xf32>
    %89 = vector.shape_cast %88 : vector<8x16x128xf32> to vector<128x128xf32>
    %c2_82 = arith.constant 2 : index
    %c1_83 = arith.constant 1 : index
    %c0_84 = arith.constant 0 : index
    %c0_85 = arith.constant 0 : index
    %90 = vector.load %arg6[%c2_82, %c1_83, %c0_84, %c0_85] : memref<3x3x128x128xf32, #tpu.memory_space<vmem>>, vector<1x1x128x128xf32>
    %91 = vector.shape_cast %90 : vector<1x1x128x128xf32> to vector<128x128xf32>
    %cst_86 = arith.constant dense<0.000000e+00> : vector<128x128xf32>
    %92 = tpu.matmul %89, %91, %cst_86 {dimension_numbers = #tpu.dot_dimension_numbers<[1], [0], [0], [1], [0, 0, 1, 1], [], []>} : vector<128x128xf32>, vector<128x128xf32>, vector<128x128xf32> -> vector<128x128xf32>
    %c0_87 = arith.constant 0 : index
    %c0_88 = arith.constant 0 : index
    %93 = vector.load %arg12[%c0_87, %c0_88] : memref<128x128xf32, #tpu.memory_space<vmem>>, vector<128x128xf32>
    %94 = arith.addf %93, %92 : vector<128x128xf32>
    %c0_89 = arith.constant 0 : index
    %c0_90 = arith.constant 0 : index
    %95 = vector.load %arg12[%c0_89, %c0_90] : memref<128x128xf32, #tpu.memory_space<vmem>>, vector<128x128xf32>
    tpu.vector_store %arg12[%c0_89, %c0_90], %94 {strides = array<i32>} : memref<128x128xf32, #tpu.memory_space<vmem>>, vector<128x128xf32>,
    %96 = vector.extract_strided_slice %33 {offsets = [2, 2, 0], sizes = [8, 16, 128], strides = [1, 1, 1]} : vector<10x24x128xf32> to vector<8x16x128xf32>
    %97 = vector.shape_cast %96 : vector<8x16x128xf32> to vector<128x128xf32>
    %c2_91 = arith.constant 2 : index
    %c2_92 = arith.constant 2 : index
    %c0_93 = arith.constant 0 : index
    %c0_94 = arith.constant 0 : index
    %98 = vector.load %arg6[%c2_91, %c2_92, %c0_93, %c0_94] : memref<3x3x128x128xf32, #tpu.memory_space<vmem>>, vector<1x1x128x128xf32>
    %99 = vector.shape_cast %98 : vector<1x1x128x128xf32> to vector<128x128xf32>
    %cst_95 = arith.constant dense<0.000000e+00> : vector<128x128xf32>
    %100 = tpu.matmul %97, %99, %cst_95 {dimension_numbers = #tpu.dot_dimension_numbers<[1], [0], [0], [1], [0, 0, 1, 1], [], []>} : vector<128x128xf32>, vector<128x128xf32>, vector<128x128xf32> -> vector<128x128xf32>
    %c0_96 = arith.constant 0 : index
    %c0_97 = arith.constant 0 : index
    %101 = vector.load %arg12[%c0_96, %c0_97] : memref<128x128xf32, #tpu.memory_space<vmem>>, vector<128x128xf32>
    %102 = arith.addf %101, %100 : vector<128x128xf32>
    %c0_98 = arith.constant 0 : index
    %c0_99 = arith.constant 0 : index
    %103 = vector.load %arg12[%c0_98, %c0_99] : memref<128x128xf32, #tpu.memory_space<vmem>>, vector<128x128xf32>
    tpu.vector_store %arg12[%c0_98, %c0_99], %102 {strides = array<i32>} : memref<128x128xf32, #tpu.memory_space<vmem>>, vector<128x128xf32>,
    %c0_100 = arith.constant 0 : index
    %c0_101 = arith.constant 0 : index
    %104 = vector.load %arg12[%c0_100, %c0_101] : memref<128x128xf32, #tpu.memory_space<vmem>>, vector<128x128xf32>
    %c0_102 = arith.constant 0 : index
    %c0_103 = arith.constant 0 : index
    %105 = vector.load %arg7[%c0_102, %c0_103] : memref<1x128xf32, #tpu.memory_space<vmem>>, vector<1x128xf32>
    %106 = vector.broadcast %105 : vector<1x128xf32> to vector<128x128xf32>
    %107 = arith.addf %104, %106 : vector<128x128xf32>
    %cst_104 = arith.constant 0.000000e+00 : f32
    %108 = vector.broadcast %cst_104 : f32 to vector<128x128xf32>
    %109 = arith.maximumf %107, %108 : vector<128x128xf32>
    %c0_105 = arith.constant 0 : index
    %c0_106 = arith.constant 0 : index
    %110 = vector.load %arg8[%c0_105, %c0_106] : memref<128x128xf32, #tpu.memory_space<vmem>>, vector<128x128xf32>
    %cst_107 = arith.constant dense<0.000000e+00> : vector<128x128xf32>
    %111 = tpu.matmul %109, %110, %cst_107 {dimension_numbers = #tpu.dot_dimension_numbers<[1], [0], [0], [1], [0, 0, 1, 1], [], []>} : vector<128x128xf32>, vector<128x128xf32>, vector<128x128xf32> -> vector<128x128xf32>
    %c0_108 = arith.constant 0 : index
    %c0_109 = arith.constant 0 : index
    %112 = vector.load %arg9[%c0_108, %c0_109] : memref<1x128xf32, #tpu.memory_space<vmem>>, vector<1x128xf32>
    %113 = vector.broadcast %112 : vector<1x128xf32> to vector<128x128xf32>
    %114 = arith.addf %111, %113 : vector<128x128xf32>
    %115 = vector.extract_strided_slice %7 {offsets = [1, 1, 0], sizes = [8, 16, 128], strides = [1, 1, 1]} : vector<10x24x128xf32> to vector<8x16x128xf32>
    %116 = vector.shape_cast %115 : vector<8x16x128xf32> to vector<128x128xf32>
    %117 = arith.addf %114, %116 : vector<128x128xf32>
    %cst_110 = arith.constant 0.000000e+00 : f32
    %118 = vector.broadcast %cst_110 : f32 to vector<128x128xf32>
    %119 = arith.maximumf %117, %118 : vector<128x128xf32>
    %120 = vector.shape_cast %119 : vector<128x128xf32> to vector<1x8x16x128xf32>
    %c0_111 = arith.constant 0 : index
    %c0_112 = arith.constant 0 : index
    %c0_113 = arith.constant 0 : index
    %c0_114 = arith.constant 0 : index
    %121 = vector.load %arg10[%c0_111, %c0_112, %c0_113, %c0_114] : memref<1x8x16x128xf32, #tpu.memory_space<vmem>>, vector<1x8x16x128xf32>
    tpu.vector_store %arg10[%c0_111, %c0_112, %c0_113, %c0_114], %120 {strides = array<i32>} : memref<1x8x16x128xf32, #tpu.memory_space<vmem>>, vector<1x8x16x128xf32>,
    return
  }
  func.func @transform_0(%arg0: i32, %arg1: i32) -> (i32, i32, i32, i32) {
    %c0_i32 = arith.constant 0 : i32
    %c0_i32_0 = arith.constant 0 : i32
    %c0_i32_1 = arith.constant 0 : i32
    return %arg0, %arg1, %c0_i32, %c0_i32_0 : i32, i32, i32, i32
  }
  func.func @transform_1(%arg0: i32, %arg1: i32) -> (i32, i32, i32, i32) {
    %c1_i32 = arith.constant 1 : i32
    %0 = arith.addi %arg1, %c1_i32 : i32
    %c4_i32 = arith.constant 4 : i32
    %1 = arith.muli %0, %c4_i32 : i32
    %c0_i32 = arith.constant 0 : i32
    %c0_i32_0 = arith.constant 0 : i32
    %c0_i32_1 = arith.constant 0 : i32
    return %arg0, %1, %c0_i32, %c0_i32_0 : i32, i32, i32, i32
  }
  func.func @transform_2(%arg0: i32, %arg1: i32) -> (i32, i32) {
    %c0_i32 = arith.constant 0 : i32
    %c0_i32_0 = arith.constant 0 : i32
    %c0_i32_1 = arith.constant 0 : i32
    return %c0_i32, %c0_i32_0 : i32, i32
  }
  func.func @transform_3(%arg0: i32, %arg1: i32) -> (i32, i32) {
    %c0_i32 = arith.constant 0 : i32
    %c0_i32_0 = arith.constant 0 : i32
    %c0_i32_1 = arith.constant 0 : i32
    return %c0_i32, %c0_i32_0 : i32, i32
  }
  func.func @transform_4(%arg0: i32, %arg1: i32) -> (i32, i32, i32, i32) {
    %c0_i32 = arith.constant 0 : i32
    %c0_i32_0 = arith.constant 0 : i32
    %c0_i32_1 = arith.constant 0 : i32
    %c0_i32_2 = arith.constant 0 : i32
    %c0_i32_3 = arith.constant 0 : i32
    return %c0_i32, %c0_i32_0, %c0_i32_1, %c0_i32_2 : i32, i32, i32, i32
  }
  func.func @transform_5(%arg0: i32, %arg1: i32) -> (i32, i32) {
    %c0_i32 = arith.constant 0 : i32
    %c0_i32_0 = arith.constant 0 : i32
    %c0_i32_1 = arith.constant 0 : i32
    return %c0_i32, %c0_i32_0 : i32, i32
  }
  func.func @transform_6(%arg0: i32, %arg1: i32) -> (i32, i32) {
    %c0_i32 = arith.constant 0 : i32
    %c0_i32_0 = arith.constant 0 : i32
    %c0_i32_1 = arith.constant 0 : i32
    return %c0_i32, %c0_i32_0 : i32, i32
  }
  func.func @transform_7(%arg0: i32, %arg1: i32) -> (i32, i32) {
    %c0_i32 = arith.constant 0 : i32
    %c0_i32_0 = arith.constant 0 : i32
    %c0_i32_1 = arith.constant 0 : i32
    return %c0_i32, %c0_i32_0 : i32, i32
  }
  func.func @transform_8(%arg0: i32, %arg1: i32) -> (i32, i32, i32, i32) {
    %c0_i32 = arith.constant 0 : i32
    %c0_i32_0 = arith.constant 0 : i32
    %c0_i32_1 = arith.constant 0 : i32
    return %arg0, %arg1, %c0_i32, %c0_i32_0 : i32, i32, i32, i32
  }
}

</mosaic_0001>

<bundles_post_ra>
// kernel: bottleneck_forward.1
= control target key start
LH: loop header
LB: loop body
LE: loop exit
PB: predicated region body
PF: predicated region fallthrough
CT: control target
= control target key end

     0   :  { %s5245_s27 = smov 0   ;;  %s5247_s28 = smov 0   ;;  %s6883_s0 = inlined_call_operand.vmem [shape: f32[2,24,24,128], index: 0, kind: input, shape index: {}, may-alias: {0,1}]   ;;  %s6884_s1 = inlined_call_operand.vmem [shape: f32[2,24,24,128], index: 1, kind: input, shape index: {}, may-alias: {0,1}]   ;;  %s6885_s2 = inlined_call_operand.vmem [shape: f32[128,128], index: 2, kind: input, shape index: {}]   ;;  %s6886_s3 = inlined_call_operand.vmem [shape: f32[1,128], index: 3, kind: input, shape index: {}]   ;;  %s6887_s4 = inlined_call_operand.vmem [shape: f32[3,3,128,128], index: 4, kind: input, shape index: {}]   ;;  %s6888_s5 = inlined_call_operand.vmem [shape: f32[1,128], index: 5, kind: input, shape index: {}]   ;;  %s6889_s6 = inlined_call_operand.vmem [shape: f32[128,128], index: 6, kind: input, shape index: {}]   ;;  %s6890_s7 = inlined_call_operand.vmem [shape: f32[1,128], index: 7, kind: input, shape index: {}]   ;;  %s6891_s8 = inlined_call_operand.vmem [shape: f32[2,16,16,128], index: 8, kind: output, shape index: {}]  }
   0x1   :  { %s5249_s29 = smov 0   ;;  %s5251_s30 = smov 0  }
   0x2   :  { %s5253_s9 = smov 0  }
   0x3 LB: > { %s27_s10 = sadd.s32 1, %s5190_s29  ;;  %s30_s11 = sadd.s32 1, %s5194_s30  ;;  %s5198_s9 = sphi %s5253_s9, %s18_s9   ;;  %s5194_s30 = sphi %s5251_s30, %s7085_s30   ;;  %s5190_s29 = sphi %s5249_s29, %s7084_s29   ;;  %s5186_s28 = sphi %s5247_s28, %s7083_s28   ;;  %s5182_s27 = sphi %s5245_s27, %s7082_s27  }
   0x4   : > { %p28_p0 = scmp.ge.s32.totalorder %s27_s10, 2  ;;  %p3409_p1 = scmp.ge.s32.totalorder %s5198_s9, 1 }
   0x5   : > { %p310_p2 = scmp.lt.s32.totalorder %s5198_s9, 5 }
   0x6   : > { %s7087_s10 = smov (%p28_p0, %s27_s10), 0  ;;  %s7089_s11 = smov (!%p28_p0, %s30_s11), %s5194_s30 }
   0x7   : > { %p311_p3 = pnand %p3409_p1, %p310_p2  ;;  %p32_p4 = scmp.ge.s32.totalorder %s7089_s11, 2 }
   0x9   : > { %s7091_s11 = smov (%p32_p4, %s7089_s11), 0  ;;  %314 = sbr.rel (%p311_p3) target bundleno = 918 (0x396), region = 52 }
  0x10   : > { %v495_v0 = vld [vmem:[%s6885_s2] sm:$0xff]  ;;  %v496_v1 = vld [vmem:[%s6885_s2 + $0x8] sm:$0xff]  ;;  %v497_v2 = vld [vmem:[%s6885_s2 + $0x10] sm:$0xff]  ;;  %s5284_s18 = sshll.u32 %s5182_s27, 3  ;;  %p367_p5 = scmp.lt.s32.totalorder %s5186_s28, 1  ;;  %vm6893_vm13 = vcmask 1046528  }
  0x11   : > { %v4613_v3 = vpack.c.bf16 %v496_v1, %v495_v0  ;;  %v498_v4 = vld [vmem:[%s6885_s2 + $0x18] sm:$0xff]  ;;  %p369_p6 = scmp.lt.s32.totalorder %s5284_s18, 23  ;;  %v499_v6 = vld [vmem:[%s6885_s2 + $0x20] sm:$0xff]  ;;  %v500_v7 = vld [vmem:[%s6885_s2 + $0x28] sm:$0xff]  ;;  %s3609_s20 = sadd.s32 8, %s5284_s18  ;;  %vm6892_vm14 = vcmask 1045504  }
  0x12   : > { %v4617_v5 = vpack.c.bf16 %v498_v4, %v497_v2  ;;  %s7093_s28 = smov (!%p367_p5, %s5186_s28), 1  ;;  %v4621_v8 = vpack.c.bf16 %v500_v7, %v499_v6  ;;  %v501_v9 = vld [vmem:[%s6885_s2 + $0x30] sm:$0xff]  ;;  %v502_v10 = vld [vmem:[%s6885_s2 + $0x38] sm:$0xff]  ;;  %v3469_v11 = vld [vmem:[%s6887_s4 + $0x180] sm:$0xff]  ;;  %p382_p7 = scmp.lt.s32.totalorder %s3609_s20, 23 }
  0x13   : > { %4614 = vmatprep.subr.bf16.mxu0 %v4613_v3  ;;  %s370_s25 = scalar_select %p369_p6, %s5284_s18, 23  ;;  %v3470_v12 = vld [vmem:[%s6887_s4 + $0x188] sm:$0xff]  ;;  %v3471_v14 = vld [vmem:[%s6887_s4 + $0x190] sm:$0xff]  ;;  %v3472_v15 = vld [vmem:[%s6887_s4 + $0x198] sm:$0xff]  ;;  %v4625_v16 = vpack.c.bf16 %v502_v10, %v501_v9 }
  0x14   : > { %4616 = vmatpush3.bf16.msra.mxu0 %v4613_v3  ;;  %s5094_s26 = smul.u32 72, %s7093_s28  ;;  %v4741_v13 = vpack.c.bf16 %v3470_v12, %v3469_v11  ;;  %v4745_v17 = vpack.c.bf16 %v3472_v15, %v3471_v14  ;;  %v3473_v18 = vld [vmem:[%s6887_s4 + $0x1a0] sm:$0xff]  ;;  %v3474_v19 = vld [vmem:[%s6887_s4 + $0x1a8] sm:$0xff]  ;;  %v505_v25 = vld [vmem:[%s6885_s2 + $0x50] sm:$0xff]  ;;  %s7095_s20 = smov (!%p382_p7, %s3609_s20), 23 }
  0x15   : > { %4618 = vmatprep.subr.bf16.mxu0 %v4617_v5  ;;  %s5093_s27 = smul.u32 3, %s370_s25  ;;  %v503_v20 = vld [vmem:[%s6885_s2 + $0x40] sm:$0xff]  ;;  %v504_v21 = vld [vmem:[%s6885_s2 + $0x48] sm:$0xff]  ;;  %v4749_v23 = vpack.c.bf16 %v3474_v19, %v3473_v18  ;;  %v506_v26 = vld [vmem:[%s6885_s2 + $0x58] sm:$0xff]  ;;  %p395_p8 = scmp.lt.s32.totalorder %s5284_s18, 15 }
  0x16   : > { %4742 = vmatprep.subr.bf16.mxu1 %v4741_v13  ;;  %v4629_v24 = vpack.c.bf16 %v504_v21, %v503_v20  ;;  %v4633_v27 = vpack.c.bf16 %v506_v26, %v505_v25  ;;  %v507_v28 = vld [vmem:[%s6885_s2 + $0x60] sm:$0xff]  ;;  %v508_v29 = vld [vmem:[%s6885_s2 + $0x68] sm:$0xff]  ;;  %v3475_v30 = vld [vmem:[%s6887_s4 + $0x1b0] sm:$0xff]  ;;  %s5095_s21 = smul.u32 3, %s7095_s20  ;;  %s3417_s15 = sshll.u32 %s7093_s28, 5 }
  0x17   : > { %s373_s19 = sadd.s32 %s5094_s26, %s5093_s27  ;;  %4744 = vmatpush3.bf16.msra.mxu1 %v4741_v13  ;;  %v4637_v31 = vpack.c.bf16 %v508_v29, %v507_v28  ;;  %v509_v32 = vld [vmem:[%s6885_s2 + $0x70] sm:$0xff]  ;;  %v3476_v33 = vld [vmem:[%s6887_s4 + $0x1b8] sm:$0xff]  ;;  %v3477_v36 = vld [vmem:[%s6887_s4 + $0x1c0] sm:$0xff] }
  0x18   : > { %4620 = vmatpush3.bf16.msra.mxu0 %v4617_v5  ;;  %s3411_s22 = sshll.u32 %s373_s19, 3  ;;  %4746 = vmatprep.subr.bf16.mxu1 %v4745_v17  ;;  %v510_v34 = vld [vmem:[%s6885_s2 + $0x78] sm:$0xff]  ;;  %v4753_v35 = vpack.c.bf16 %v3476_v33, %v3475_v30  ;;  %v3478_v37 = vld [vmem:[%s6887_s4 + $0x1c8] sm:$0xff]  ;;  %v903_v40 = vld [vmem:[%s6887_s4] sm:$0xff]  ;;  %s386_s23 = sadd.s32 %s5095_s21, %s5094_s26 }
  0x19   : > { %4622 = vmatprep.subr.bf16.mxu0 %v4621_v8  ;;  %s5323_s27 = scalar_lea.vmem %s6883_s0, %s3411_s22  ;;  %v4757_v38 = vpack.c.bf16 %v3478_v37, %v3477_v36  ;;  %v4641_v39 = vpack.c.bf16 %v510_v34, %v509_v32  ;;  %v904_v41 = vld [vmem:[%s6887_s4 + $0x8] sm:$0xff]  ;;  %v905_v43 = vld [vmem:[%s6887_s4 + $0x10] sm:$0xff]  ;;  %v906_v44 = vld [vmem:[%s6887_s4 + $0x18] sm:$0xff]  ;;  %s3414_s24 = sshll.u32 %s386_s23, 3 }
  0x1a   : > { %v404_v22 = vld [vmem:[%s5323_s27] sm:$0xff]  ;;  %v4645_v42 = vpack.c.bf16 %v904_v41, %v903_v40  ;;  %v405_v45 = vld [vmem:[%s5323_s27 + $0x8] sm:$0xff]  ;;  %v406_v46 = vld [vmem:[%s5323_s27 + $0x10] sm:$0xff]  ;;  %v4649_v47 = vpack.c.bf16 %v906_v44, %v905_v43  ;;  %s5438_s12 = scalar_lea.vmem %s6884_s1, %s3414_s24  ;;  %v773_v44 = vlaneseq }
  0x1b   : > { %4008 = vmatprep.mubr.f32.mxu0 %v404_v22  ;;  %4748 = vmatpush3.bf16.msra.mxu1 %v4745_v17  ;;  %v907_v48 = vld [vmem:[%s6887_s4 + $0x20] sm:$0xff]  ;;  %v908_v49 = vld [vmem:[%s6887_s4 + $0x28] sm:$0xff]  ;;  %v407_v50 = vld [vmem:[%s5323_s27 + $0x18] sm:$0xff] }
  0x1c   : > { %4624 = vmatpush3.bf16.msra.mxu0 %v4621_v8  ;;  %4750 = vmatprep.subr.bf16.mxu1 %v4749_v23  ;;  %v408_v51 = vld [vmem:[%s5323_s27 + $0x20] sm:$0xff]  ;;  %v4653_v52 = vpack.c.bf16 %v908_v49, %v907_v48  ;;  %v909_v53 = vld [vmem:[%s6887_s4 + $0x30] sm:$0xff]  ;;  %v910_v54 = vld [vmem:[%s6887_s4 + $0x38] sm:$0xff]  ;;  %v6924_v48 = vmov 0  ;;  %v6927_v49 = vmov 0 }
  0x1d   : > { %4626 = vmatprep.subr.bf16.mxu0 %v4625_v16  ;;  %v409_v55 = vld [vmem:[%s5323_s27 + $0x28] sm:$0xff]  ;;  %v410_v56 = vld [vmem:[%s5323_s27 + $0x30] sm:$0xff]  ;;  %v4657_v57 = vpack.c.bf16 %v910_v54, %v909_v53  ;;  %v911_v58 = vld [vmem:[%s6887_s4 + $0x40] sm:$0xff] }
  0x1e   : > { %v912_v59 = vld [vmem:[%s6887_s4 + $0x48] sm:$0xff]  ;;  %v411_v60 = vld [vmem:[%s5323_s27 + $0x38] sm:$0xff]  ;;  %v412_v61 = vld [vmem:[%s5323_s27 + $0x40] sm:$0xff] }
  0x1f   : > { %4752 = vmatpush3.bf16.msra.mxu1 %v4749_v23  ;;  %v4661_v62 = vpack.c.bf16 %v912_v59, %v911_v58  ;;  %v913_v63 = vld [vmem:[%s6887_s4 + $0x50] sm:$0xff]  ;;  %v914_v0 = vld [vmem:[%s6887_s4 + $0x58] sm:$0xff]  ;;  %v413_v1 = vld [vmem:[%s5323_s27 + $0x48] sm:$0xff] }
  0x20   : > { %4628 = vmatpush3.bf16.msra.mxu0 %v4625_v16  ;;  %4754 = vmatprep.subr.bf16.mxu1 %v4753_v35  ;;  %v414_v2 = vld [vmem:[%s5323_s27 + $0x50] sm:$0xff]  ;;  %v4665_v3 = vpack.c.bf16 %v914_v0, %v913_v63  ;;  %v915_v4 = vld [vmem:[%s6887_s4 + $0x60] sm:$0xff]  ;;  %v916_v5 = vld [vmem:[%s6887_s4 + $0x68] sm:$0xff] }
  0x21   : > { %4630 = vmatprep.subr.bf16.mxu0 %v4629_v24  ;;  %v415_v6 = vld [vmem:[%s5323_s27 + $0x58] sm:$0xff]  ;;  %v416_v7 = vld [vmem:[%s5323_s27 + $0x60] sm:$0xff]  ;;  %v4669_v8 = vpack.c.bf16 %v916_v5, %v915_v4  ;;  %v417_v9 = vld [vmem:[%s5323_s27 + $0x68] sm:$0xff] }
  0x22   : > { %v418_v10 = vld [vmem:[%s5323_s27 + $0x70] sm:$0xff]  ;;  %v419_v11 = vld [vmem:[%s5323_s27 + $0x78] sm:$0xff]  ;;  %v420_v12 = vld [vmem:[%s5323_s27 + $0x80] sm:$0xff] }
  0x23   : > { %4756 = vmatpush3.bf16.msra.mxu1 %v4753_v35  ;;  %v421_v13 = vld [vmem:[%s5323_s27 + $0x88] sm:$0xff]  ;;  %v422_v14 = vld [vmem:[%s5323_s27 + $0x90] sm:$0xff]  ;;  %v423_v15 = vld [vmem:[%s5323_s27 + $0x98] sm:$0xff] }
  0x24   : > { %4632 = vmatpush3.bf16.msra.mxu0 %v4629_v24  ;;  %4758 = vmatprep.subr.bf16.mxu1 %v4757_v38  ;;  %v424_v16 = vld [vmem:[%s5323_s27 + $0xa0] sm:$0xff]  ;;  %v425_v17 = vld [vmem:[%s5323_s27 + $0xa8] sm:$0xff]  ;;  %v426_v18 = vld [vmem:[%s5323_s27 + $0xb0] sm:$0xff] }
  0x25   : > { %4634 = vmatprep.subr.bf16.mxu0 %v4633_v27  ;;  %v427_v19 = vld [vmem:[%s5323_s27 + $0xb8] sm:$0xff]  ;;  %v452_v20 = vld [vmem:[%s5438_s12] sm:$0xff]  ;;  %v453_v21 = vld [vmem:[%s5438_s12 + $0x8] sm:$0xff] }
  0x26   : > { %v454_v22 = vld [vmem:[%s5438_s12 + $0x10] sm:$0xff]  ;;  %v455_v23 = vld [vmem:[%s5438_s12 + $0x18] sm:$0xff]  ;;  %v456_v24 = vld [vmem:[%s5438_s12 + $0x20] sm:$0xff] }
  0x27   : > { %4760 = vmatpush3.bf16.msra.mxu1 %v4757_v38  ;;  %v457_v25 = vld [vmem:[%s5438_s12 + $0x28] sm:$0xff]  ;;  %v3479_v26 = vld [vmem:[%s6887_s4 + $0x1d0] sm:$0xff]  ;;  %v918_v30 = vld [vmem:[%s6887_s4 + $0x78] sm:$0xff] }
  0x28   : > { %4636 = vmatpush3.bf16.msra.mxu0 %v4633_v27  ;;  %v3480_v27 = vld [vmem:[%s6887_s4 + $0x1d8] sm:$0xff]  ;;  %v917_v29 = vld [vmem:[%s6887_s4 + $0x70] sm:$0xff]  ;;  %v3481_v32 = vld [vmem:[%s6887_s4 + $0x1e0] sm:$0xff] }
  0x29   : > { %4638 = vmatprep.subr.bf16.mxu0 %v4637_v31  ;;  %v4761_v28 = vpack.c.bf16 %v3480_v27, %v3479_v26  ;;  %v3482_v33 = vld [vmem:[%s6887_s4 + $0x1e8] sm:$0xff]  ;;  %v3483_v35 = vld [vmem:[%s6887_s4 + $0x1f0] sm:$0xff]  ;;  %v3484_v36 = vld [vmem:[%s6887_s4 + $0x1f8] sm:$0xff] }
  0x2a   : > { %v4765_v34 = vpack.c.bf16 %v3482_v33, %v3481_v32  ;;  %v4769_v37 = vpack.c.bf16 %v3484_v36, %v3483_v35  ;;  %v3437_v38 = vld [vmem:[%s6887_s4 + $0x80] sm:$0xff]  ;;  %v3439_v59 = vld [vmem:[%s6887_s4 + $0x90] sm:$0xff]  ;;  %v3444_v26 = vld [vmem:[%s6887_s4 + $0xb8] sm:$0xff] }
  0x2b   : > { %4762 = vmatprep.subr.bf16.mxu1 %v4761_v28  ;;  %v3501_v41 = vld [vmem:[%s6887_s4 + $0x200] sm:$0xff] }
  0x2c   : > { %4640 = vmatpush3.bf16.msra.mxu0 %v4637_v31  ;;  %v4673_v31 = vpack.c.bf16 %v918_v30, %v917_v29  ;;  %4764 = vmatpush3.bf16.msra.mxu1 %v4761_v28  ;;  %v3505_v58 = vld [vmem:[%s6887_s4 + $0x220] sm:$0xff]  ;;  %v3510_v30 = vld [vmem:[%s6887_s4 + $0x248] sm:$0xff] }
  0x2d   : > { %4642 = vmatprep.subr.bf16.mxu0 %v4641_v39  ;;  %4766 = vmatprep.subr.bf16.mxu1 %v4765_v34 }
  0x30   : > { %4644 = vmatpush3.bf16.msra.mxu0 %v4641_v39  ;;  %4768 = vmatpush3.bf16.msra.mxu1 %v4765_v34  ;;  %v3438_v39 = vld [vmem:[%s6887_s4 + $0x88] sm:$0xff] }
  0x31   : > { %4646 = vmatprep.subr.bf16.mxu0 %v4645_v42  ;;  %4770 = vmatprep.subr.bf16.mxu1 %v4769_v37  ;;  %v4677_v40 = vpack.c.bf16 %v3438_v39, %v3437_v38  ;;  %v6942_v39 = vmov 0 }
  0x33   : > { %4009 = vmatmul.mubr.f32.vlgmr.msra.gmra.mrb[0].mxu0 %v405_v45  ;;  %v5487_v45 = vstv %s5284_s18  ;;  %s7097_s18 = smov (!%p395_p8, %s5284_s18), 15 }
  0x34   : > { %4011 = vmatprep.mubr.f32.mxu0 %v406_v46  ;;  %4648 = vmatpush3.bf16.msra.mxu0 %v4645_v42  ;;  %v3502_v42 = vld [vmem:[%s6887_s4 + $0x208] sm:$0xff]  ;;  %v5489_v46 = vshrl.u32 %v773_v44, 7  ;;  %vm777_vm5 = vcmp.ge.s32.totalorder %v5487_v45, 1  ;;  %vm787_vm6 = vcmp.le.s32.totalorder %v5487_v45, 16  ;;  %v766_v5 = vadd.s32 3, %v5487_v45 }
  0x35   : > { %4650 = vmatprep.subr.bf16.mxu0 %v4649_v47  ;;  %4772 = vmatpush3.bf16.msra.mxu1 %v4769_v37  ;;  %v5483_v43 = vpack.c.bf16 %v3502_v42, %v3501_v41  ;;  %vm5513_vm7 = vmand %vm777_vm5, %vm787_vm6  ;;  %v5610_v35 = vadd.s32 4, %v5487_v45 }
  0x36   : > { %vm6895_vm2 = vcmp.ge.s32.totalorder %v5489_v46, 1  ;;  %v5518_v53 = vadd.s32 16, %v5489_v46 }
  0x37   : > { %4012 = vmatmul.mubr.f32.gmra.mrb[2].mxu0 %v407_v50  ;;  %4774 = vmatprep.subr.bf16.mxu1 %v5483_v43  ;;  %v764_v50 = vadd.s32 1, %v5487_v45  ;;  %vm5526_vm10 = vmand %vm5513_vm7, %vm6895_vm2 }
  0x38   : > { %4014 = vmatprep.mubr.f32.mxu0 %v408_v51  ;;  %4652 = vmatpush3.bf16.msra.mxu0 %v4649_v47  ;;  %v772_v47 = vadd.s32 9, %v5487_v45  ;;  %v5511_v51 = vld [vmem:[%s6886_s3] ss:$0 sm:$0xff]  ;;  %vm6894_vm11 = vcmp.le.s32.totalorder %v5518_v53, 16 }
  0x39   : > { %4654 = vmatprep.subr.bf16.mxu0 %v4653_v52  ;;  %vm778_vm8 = vcmp.ge.s32.totalorder %v764_v50, 1  ;;  %vm788_vm9 = vcmp.le.s32.totalorder %v764_v50, 16 }
  0x3a   : > { %vm786_vm0 = vcmp.ge.s32.totalorder %v772_v47, 1  ;;  %vm796_vm1 = vcmp.le.s32.totalorder %v772_v47, 16  ;;  %vm5537_vm12 = vmand %vm778_vm8, %vm788_vm9  ;;  %vm790_vm8 = vcmp.le.s32.totalorder %v766_v5, 16 }
  0x3b   : > { %4015 = vmatmul.mubr.f32.gmra.mrb[4].mxu0 %v409_v55  ;;  %vm5493_vm3 = vmand %vm786_vm0, %vm796_vm1 }
  0x3c   : > { %4017 = vmatprep.mubr.f32.mxu0 %v410_v56  ;;  %4656 = vmatpush3.bf16.msra.mxu0 %v4653_v52  ;;  %v6925_v48 = vsel %vm5493_vm3, 4294967295, %v6924_v48  ;;  %vm5501_vm4 = vmand %vm5493_vm3, %vm6895_vm2 }
  0x3d   : > { %4658 = vmatprep.subr.bf16.mxu0 %v4657_v57  ;;  %6926 = vst [vmem:[#allocation4_spill] sm:$0xff] %v6925_v48  ;;  %v6928_v49 = vsel %vm5501_vm4, 4294967295, %v6927_v49  ;;  %vm5561_vm15 = vmand %vm5537_vm12, %vm6895_vm2 }
  0x3e   : > { %6929 = vst [vmem:[#allocation5_spill] sm:$0xff] %v6928_v49  ;;  %vm5569_vm0 = vmand %vm5513_vm7, %vm6894_vm11 }
  0x3f   : > { %4018 = vmatmul.mubr.f32.gmra.mrb[6].mxu0 %v411_v60  ;;  %v3440_v60 = vld [vmem:[%s6887_s4 + $0x98] sm:$0xff]  ;;  %vm5604_vm6 = vmand %vm5537_vm12, %vm6894_vm11 }
  0x40   : > { %4020 = vmatprep.mubr.f32.mxu0 %v412_v61  ;;  %4660 = vmatpush3.bf16.msra.mxu0 %v4657_v57 }
  0x41   : > { %4662 = vmatprep.subr.bf16.mxu0 %v4661_v62 }
  0x43   : > { %4021 = vmatmul.mubr.f32.gmra.mrb[8].mxu0 %v413_v1  ;;  %v765_v1 = vadd.s32 2, %v5487_v45 }
  0x44   : > { %4023 = vmatprep.mubr.f32.mxu0 %v414_v2  ;;  %4664 = vmatpush3.bf16.msra.mxu0 %v4661_v62  ;;  %v3445_v62 = vld [vmem:[%s6887_s4 + $0xc0] sm:$0xff] }
  0x45   : > { %4666 = vmatprep.subr.bf16.mxu0 %v4665_v3  ;;  %vm779_vm1 = vcmp.ge.s32.totalorder %v765_v1, 1  ;;  %vm789_vm5 = vcmp.le.s32.totalorder %v765_v1, 16 }
  0x46   : > { %vm5616_vm9 = vmand %vm779_vm1, %vm789_vm5  ;;  %vm791_vm1 = vcmp.le.s32.totalorder %v5610_v35, 16 }
  0x47   : > { %4024 = vmatmul.mubr.f32.gmra.mrb[10].mxu0 %v415_v6  ;;  %v4681_v6 = vpack.c.bf16 %v3440_v60, %v3439_v59  ;;  %v6943_v39 = vsel %vm5616_vm9, 4294967295, %v6942_v39  ;;  %v3506_v59 = vld [vmem:[%s6887_s4 + $0x228] sm:$0xff] }
  0x48   : > { %4026 = vmatprep.mubr.f32.mxu0 %v416_v7  ;;  %4668 = vmatpush3.bf16.msra.mxu0 %v4665_v3  ;;  %v3441_v7 = vld [vmem:[%s6887_s4 + $0xa0] sm:$0xff]  ;;  %6944 = vst [vmem:[#allocation6_spill] sm:$0xff] %v6943_v39 }
  0x49   : > { %4670 = vmatprep.subr.bf16.mxu0 %v4669_v8 }
  0x4b   : > { %4027 = vmatmul.mubr.f32.gmra.mrb[12].mxu0 %v417_v9 }
  0x4c   : > { %4029 = vmatprep.mubr.f32.mxu0 %v418_v10  ;;  %4672 = vmatpush3.bf16.msra.mxu0 %v4669_v8  ;;  %v3442_v8 = vld [vmem:[%s6887_s4 + $0xa8] sm:$0xff] }
  0x4d   : > { %4674 = vmatprep.subr.bf16.mxu0 %v4673_v31 }
  0x4f   : > { %4030 = vmatmul.mubr.f32.gmra.mrb[14].mxu0 %v419_v11 }
  0x50   : > { %4032 = vmatprep.mubr.f32.mxu0 %v420_v12  ;;  %4676 = vmatpush3.bf16.msra.mxu0 %v4673_v31 }
  0x51   : > { %4678 = vmatprep.subr.bf16.mxu0 %v4677_v40 }
  0x53   : > { %4033 = vmatmul.mubr.f32.gmra.mrb[16].mxu0 %v421_v13 }
  0x54   : > { %4035 = vmatprep.mubr.f32.mxu0 %v422_v14 }
  0x57   : > { %4036 = vmatmul.mubr.f32.gmra.mrb[18].mxu0 %v423_v15 }
  0x58   : > { %4038 = vmatprep.mubr.f32.mxu0 %v424_v16 }
  0x5b   : > { %4039 = vmatmul.mubr.f32.gmra.mrb[20].mxu0 %v425_v17 }
  0x5c   : > { %4041 = vmatprep.mubr.f32.mxu0 %v426_v18 }
  0x5f   : > { %4042 = vmatmul.mubr.f32.gmra.mrb[22].mxu0 %v427_v19 }
  0x60   : > { %4044 = vmatprep.mubr.f32.mxu0 %v452_v20  ;;  %v4685_v20 = vpack.c.bf16 %v3442_v8, %v3441_v7  ;;  %v6952_v8 = vmov 0 }
  0x63   : > { %4045 = vmatmul.mubr.f32.gmra.mrb[24].mxu0 %v453_v21  ;;  %v3503_v21 = vld [vmem:[%s6887_s4 + $0x210] sm:$0xff] }
  0x64   : > { %4047 = vmatprep.mubr.f32.mxu0 %v454_v22 }
  0x67   : > { %4048 = vmatmul.mubr.f32.gmra.mrb[26].mxu0 %v455_v23 }
  0x68   : > { %4050 = vmatprep.mubr.f32.mxu0 %v456_v24  ;;  %v3504_v24 = vld [vmem:[%s6887_s4 + $0x218] sm:$0xff] }
  0x6b   : > { %4051 = vmatmul.mubr.f32.gmra.mrb[28].mxu0 %v457_v25  ;;  %v3443_v25 = vld [vmem:[%s6887_s4 + $0xb0] sm:$0xff] }
  0x6c   : > { %v4689_v41 = vpack.c.bf16 %v3444_v26, %v3443_v25  ;;  %v3509_v26 = vld [vmem:[%s6887_s4 + $0x240] sm:$0xff] }
 0x106   : > { %v4010_v54 = vpop.f32.mrb[0].mxu0 }
 0x107   : > { %v590_v55 = vadd.f32 %v4010_v54, %v5511_v51  ;;  %v584_v56 = vpop.f32.mrb[1].mxu0 }
 0x108   : > { %v585_v57 = vadd.f32 %v5511_v51, %v584_v56 }
 0x109   : > { %v734_v61 = vmax.f32 %v590_v55, 0.0 }
 0x10a   : > { %v733_v63 = vmax.f32 %v585_v57, 0.0  ;;  %v4013_v0 = vpop.f32.mrb[2].mxu0  ;;  %v6945_v57 = vmov 0 }
 0x10b   : > { %v874_v2 = vsel %vm5513_vm7, %v734_v61, 0.0  ;;  %v600_v3 = vadd.f32 %v4013_v0, %v5511_v51  ;;  %v594_v4 = vpop.f32.mrb[3].mxu0 }
 0x10c   : > { %v1106_v9 = vrot.slane %v874_v2, 1  ;;  %v1373_v10 = vrot.slane %v874_v2, 2  ;;  %v873_v11 = vsel %vm5526_vm10, %v733_v63, 0.0  ;;  %v595_v12 = vadd.f32 %v5511_v51, %v594_v4  ;;  %4085 = vmatprep.mubr.msk.f32.mxu0 %vm5526_vm10, %v733_v63  ;;  %v3446_v63 = vld [vmem:[%s6887_s4 + $0xc8] sm:$0xff] }
 0x10d   : > { %v1105_v14 = vrot.slane %v873_v11, 1  ;;  %v1372_v15 = vrot.slane %v873_v11, 2  ;;  %v736_v16 = vmax.f32 %v600_v3, 0.0  ;;  %4086 = vmatmul.mubr.msk.f32.vlgmr.msra.gmra.mrb[30].mxu0 %vm5513_vm7, %v734_v61  ;;  %vm780_vm7 = vcmp.ge.s32.totalorder %v766_v5, 1 }
 0x10e   : > { %v735_v18 = vmax.f32 %v595_v12, 0.0  ;;  %v4016_v19 = vpop.f32.mrb[4].mxu0  ;;  %4680 = vmatpush3.bf16.msra.mxu0 %v4677_v40  ;;  %v4777_v40 = vpack.c.bf16 %v3504_v24, %v3503_v21  ;;  %vm5638_vm10 = vmand %vm780_vm7, %vm790_vm8  ;;  %v6948_v61 = vmov 0  ;;  %v4781_v12 = vpack.c.bf16 %v3506_v59, %v3505_v58 }
 0x10f   : > { %v610_v22 = vadd.f32 %v4016_v19, %v5511_v51  ;;  %v604_v23 = vpop.f32.mrb[5].mxu0  ;;  %4088 = vmatprep.mubr.msk.f32.mxu0 %vm5561_vm15, %v736_v16  ;;  %4253 = vmatprep.mubr.msk.f32.mxu1 %vm5561_vm15, %v736_v16  ;;  %v5593_v27 = vsel %vm6893_vm13, %v1105_v14, %v1106_v9  ;;  %v5596_v28 = vsel %vm6892_vm14, %v1372_v15, %v1373_v10  ;;  %v876_v37 = vsel %vm5561_vm15, %v736_v16, 0.0  ;;  %v3508_v14 = vld [vmem:[%s6887_s4 + $0x238] sm:$0xff]  ;;  %v3447_v15 = vld [vmem:[%s6887_s4 + $0xd0] sm:$0xff] }
 0x110   : > { %v875_v29 = vsel %vm5569_vm0, %v735_v18, 0.0  ;;  %v605_v31 = vadd.f32 %v5511_v51, %v604_v23  ;;  %4682 = vmatprep.subr.bf16.mxu0 %v4681_v6  ;;  %v6946_v57 = vsel %vm5638_vm10, 4294967295, %v6945_v57  ;;  %v1110_v0 = vrot.slane %v876_v37, 1  ;;  %vm5675_vm0 = vmand %vm5638_vm10, %vm6895_vm2  ;;  %v3448_v16 = vld [vmem:[%s6887_s4 + $0xd8] sm:$0xff] }
 0x111   : > { %v1108_v32 = vrot.slane %v875_v29, 1  ;;  %v1375_v33 = vrot.slane %v875_v29, 2  ;;  %v738_v34 = vmax.f32 %v610_v22, 0.0  ;;  %6947 = vst [vmem:[#allocation7_spill] sm:$0xff] %v6946_v57  ;;  %vm781_vm15 = vcmp.ge.s32.totalorder %v5610_v35, 1 }
 0x112   : > { %v737_v36 = vmax.f32 %v605_v31, 0.0  ;;  %v4019_v38 = vpop.f32.mrb[6].mxu0  ;;  %4684 = vmatpush3.bf16.msra.mxu0 %v4681_v6  ;;  %v1377_v5 = vrot.slane %v876_v37, 2  ;;  %v6953_v8 = vsel %vm5675_vm0, 4294967295, %v6952_v8  ;;  %v4693_v13 = vpack.c.bf16 %v3446_v63, %v3445_v62  ;;  %vm5731_vm5 = vmand %vm781_vm15, %vm791_vm1  ;;  %v3449_v31 = vld [vmem:[%s6887_s4 + $0xe0] sm:$0xff] }
 0x113   : > { %v878_v42 = vsel %vm5604_vm6, %v738_v34, 0.0  ;;  %v620_v44 = vadd.f32 %v4019_v38, %v5511_v51  ;;  %v614_v47 = vpop.f32.mrb[7].mxu0  ;;  %4686 = vmatprep.subr.bf16.mxu0 %v4685_v20  ;;  %v5624_v50 = vsel %vm6893_vm13, %v1106_v9, %v1108_v32  ;;  %v5627_v52 = vsel %vm6892_vm14, %v1373_v10, %v1375_v33  ;;  %6954 = vst [vmem:[#allocation10_spill] sm:$0xff] %v6953_v8  ;;  %v3507_v9 = vld [vmem:[%s6887_s4 + $0x230] sm:$0xff]  ;;  %v3450_v32 = vld [vmem:[%s6887_s4 + $0xe8] sm:$0xff]  ;;  %vm5755_vm8 = vmand %vm5731_vm5, %vm6895_vm2 }
 0x114   : > { %v1113_v54 = vrot.slane %v878_v42, 1  ;;  %v877_v55 = vsel %vm5537_vm12, %v737_v36, 0.0  ;;  %v615_v56 = vadd.f32 %v5511_v51, %v614_v47  ;;  %4089 = vmatmul.mubr.msk.f32.gmra.mrb[32].mxu0 %vm5537_vm12, %v737_v36  ;;  %4254 = vmatmul.mubr.msk.f32.vlgmr.msra.gmra.mrb[0].mxu1 %vm5537_vm12, %v737_v36  ;;  %v1380_v60 = vrot.slane %v878_v42, 2  ;;  %vm5652_vm12 = vmand %vm5616_vm9, %vm6895_vm2  ;;  %v3512_v47 = vld [vmem:[%s6887_s4 + $0x258] sm:$0xff]  ;;  %v3521_v8 = vld [vmem:[%s6887_s4 + $0x2a0] sm:$0xff] }
 0x115   : > { %v6949_v61 = vsel %vm5652_vm12, 4294967295, %v6948_v61  ;;  %4776 = vmatpush3.bf16.msra.mxu1 %v5483_v43  ;;  %v1111_v1 = vrot.slane %v877_v55, 1  ;;  %v1378_v2 = vrot.slane %v877_v55, 2  ;;  %v5666_v43 = vmax.f32 %v620_v44, 0.0  ;;  %v3511_v44 = vld [vmem:[%s6887_s4 + $0x250] sm:$0xff]  ;;  %v3452_v55 = vld [vmem:[%s6887_s4 + $0xf8] sm:$0xff] }
 0x116   : > { %6950 = vst [vmem:[#allocation8_spill] sm:$0xff] %v6949_v61  ;;  %v5663_v3 = vmax.f32 %v615_v56, 0.0  ;;  %v4022_v4 = vpop.f32.mrb[8].mxu0  ;;  %4778 = vmatprep.subr.bf16.mxu1 %v4777_v40  ;;  %4688 = vmatpush3.bf16.msra.mxu0 %v4685_v20  ;;  %v768_v19 = vadd.s32 5, %v5487_v45  ;;  %v6956_v23 = vmov 0  ;;  %v4785_v24 = vpack.c.bf16 %v3508_v14, %v3507_v9  ;;  %v3454_v9 = vld [vmem:[%s6887_s4 + $0x108] sm:$0xff] }
 0x117   : > { %6951 = vst [vmem:[#allocation9_spill] sm:$0xff] %v5666_v43  ;;  %v630_v6 = vadd.f32 %v4022_v4, %v5511_v51  ;;  %v5669_v7 = vpop.f32.mrb[9].mxu0  ;;  %4690 = vmatprep.subr.bf16.mxu0 %v4689_v41  ;;  %v5683_v10 = vsel %vm6893_vm13, %v1110_v0, %v1111_v1  ;;  %v5686_v11 = vsel %vm6893_vm13, %v1111_v1, %v1113_v54  ;;  %v6957_v23 = vsel %vm5731_vm5, 4294967295, %v6956_v23  ;;  %v3451_v54 = vld [vmem:[%s6887_s4 + $0xf0] sm:$0xff]  ;;  %v3513_v1 = vld [vmem:[%s6887_s4 + $0x260] sm:$0xff] }
 0x118   : > { %4091 = vmatprep.mubr.msk.f32.mxu0 %vm5652_vm12, %v5663_v3  ;;  %4256 = vmatprep.mubr.msk.f32.mxu1 %vm5652_vm12, %v5663_v3  ;;  %v5705_v17 = vsel %vm6892_vm14, %v1377_v5, %v1378_v2  ;;  %v5717_v20 = vsel %vm6892_vm14, %v1378_v2, %v1380_v60  ;;  %6958 = vst [vmem:[#allocation12_spill] sm:$0xff] %v6957_v23  ;;  %vm782_vm6 = vcmp.ge.s32.totalorder %v768_v19, 1  ;;  %vm792_vm7 = vcmp.le.s32.totalorder %v768_v19, 16  ;;  %v3514_v5 = vld [vmem:[%s6887_s4 + $0x268] sm:$0xff] }
 0x119   : > { %v5707_v18 = vmax.f32 %v630_v6, 0.0  ;;  %4092 = vmatmul.mubr.msk.f32.gmra.mrb[34].mxu0 %vm5616_vm9, %v5666_v43  ;;  %4257 = vmatmul.mubr.msk.f32.gmra.mrb[2].mxu1 %vm5616_vm9, %v5666_v43  ;;  %v4697_v25 = vpack.c.bf16 %v3448_v16, %v3447_v15  ;;  %v4789_v38 = vpack.c.bf16 %v3510_v30, %v3509_v26  ;;  %vm5768_vm15 = vmand %vm782_vm6, %vm792_vm7  ;;  %v769_v59 = vadd.s32 6, %v5487_v45  ;;  %v3453_v6 = vld [vmem:[%s6887_s4 + $0x100] sm:$0xff]  ;;  %v3516_v26 = vld [vmem:[%s6887_s4 + $0x278] sm:$0xff] }
 0x11a   : > { %v5719_v21 = vpop.f32.mrb[10].mxu0  ;;  %4780 = vmatpush3.bf16.msra.mxu1 %v4777_v40  ;;  %4692 = vmatpush3.bf16.msra.mxu0 %v4689_v41  ;;  %v4701_v40 = vpack.c.bf16 %v3450_v32, %v3449_v31  ;;  %vm5796_vm1 = vmand %vm5768_vm15, %vm6895_vm2  ;;  %v6965_v0 = vmov 0  ;;  %v4793_v2 = vpack.c.bf16 %v3512_v47, %v3511_v44  ;;  %v4705_v4 = vpack.c.bf16 %v3452_v55, %v3451_v54  ;;  %v3518_v44 = vld [vmem:[%s6887_s4 + $0x288] sm:$0xff] }
 0x11b   : > { %6955 = vst [vmem:[#allocation11_spill] sm:$0xff] %v5707_v18  ;;  %v634_v22 = vpop.f32.mrb[11].mxu0  ;;  %4094 = vmatprep.mubr.msk.f32.mxu0 %vm5675_vm0, %v5707_v18  ;;  %4259 = vmatprep.mubr.msk.f32.mxu1 %vm5675_vm0, %v5707_v18  ;;  %v6966_v0 = vsel %vm5796_vm1, 4294967295, %v6965_v0  ;;  %vm783_vm6 = vcmp.ge.s32.totalorder %v769_v59, 1  ;;  %vm793_vm7 = vcmp.le.s32.totalorder %v769_v59, 16  ;;  %v770_v14 = vadd.s32 7, %v5487_v45 }
 0x11c   : > { %v635_v29 = vadd.f32 %v5511_v51, %v634_v22  ;;  %4782 = vmatprep.subr.bf16.mxu1 %v4781_v12  ;;  %4694 = vmatprep.subr.bf16.mxu0 %v4693_v13  ;;  %v4797_v19 = vpack.c.bf16 %v3514_v5, %v3513_v1  ;;  %v5836_v22 = vpack.c.bf16 %v3454_v9, %v3453_v6  ;;  %vm5847_vm14 = vmand %vm783_vm6, %vm793_vm7 }
 0x11d   : > { %vm784_vm13 = vcmp.ge.s32.totalorder %v770_v14, 1  ;;  %vm794_vm11 = vcmp.le.s32.totalorder %v770_v14, 16  ;;  %vm5866_vm6 = vmand %vm5847_vm14, %vm6895_vm2 }
 0x11e   : > { %v5748_v33 = vmax.f32 %v635_v29, 0.0  ;;  %v4028_v34 = vpop.f32.mrb[12].mxu0  ;;  %4784 = vmatpush3.bf16.msra.mxu1 %v4781_v12  ;;  %4696 = vmatpush3.bf16.msra.mxu0 %v4693_v13  ;;  %v6967_v29 = vmov 0  ;;  %vm5870_vm7 = vmand %vm784_vm13, %vm794_vm11 }
 0x11f   : > { %v650_v35 = vadd.f32 %v4028_v34, %v5511_v51  ;;  %v644_v36 = vpop.f32.mrb[13].mxu0  ;;  %4786 = vmatprep.subr.bf16.mxu1 %v4785_v24  ;;  %4698 = vmatprep.subr.bf16.mxu0 %v4697_v25  ;;  %v6968_v29 = vsel %vm5847_vm14, 4294967295, %v6967_v29  ;;  %vm5899_vm11 = vmand %vm5870_vm7, %vm6895_vm2 }
 0x120   : > { %6959 = vst [vmem:[#allocation13_spill] sm:$0xff] %v5748_v33  ;;  %v645_v41 = vadd.f32 %v5511_v51, %v644_v36  ;;  %4095 = vmatmul.mubr.msk.f32.gmra.mrb[36].mxu0 %vm5638_vm10, %v5748_v33  ;;  %4260 = vmatmul.mubr.msk.f32.gmra.mrb[4].mxu1 %vm5638_vm10, %v5748_v33 }
 0x121   : > { %v5787_v60 = vmax.f32 %v650_v35, 0.0 }
 0x122   : > { %v5784_v56 = vmax.f32 %v645_v41, 0.0  ;;  %v4031_v58 = vpop.f32.mrb[14].mxu0  ;;  %4788 = vmatpush3.bf16.msra.mxu1 %v4785_v24  ;;  %4700 = vmatpush3.bf16.msra.mxu0 %v4697_v25  ;;  %v3515_v25 = vld [vmem:[%s6887_s4 + $0x270] sm:$0xff]  ;;  %v3517_v41 = vld [vmem:[%s6887_s4 + $0x280] sm:$0xff] }
 0x123   : > { %6964 = vst [vmem:[#allocation14_spill] sm:$0xff] %v5787_v60  ;;  %v660_v62 = vadd.f32 %v4031_v58, %v5511_v51  ;;  %v5790_v63 = vpop.f32.mrb[15].mxu0  ;;  %4790 = vmatprep.subr.bf16.mxu1 %v4789_v38  ;;  %4702 = vmatprep.subr.bf16.mxu0 %v4701_v40  ;;  %v4801_v35 = vpack.c.bf16 %v3516_v26, %v3515_v25  ;;  %v3455_v26 = vld [vmem:[%s6887_s4 + $0x110] sm:$0xff]  ;;  %v7057_v25 = vld [vmem:[#allocation4_spill] sm:$0xff] }
 0x124   : > { %4097 = vmatprep.mubr.msk.f32.mxu0 %vm5755_vm8, %v5784_v56  ;;  %4262 = vmatprep.mubr.msk.f32.mxu1 %vm5755_vm8, %v5784_v56 }
 0x125   : > { %v5818_v12 = vmax.f32 %v660_v62, 0.0  ;;  %4098 = vmatmul.mubr.msk.f32.gmra.mrb[38].mxu0 %vm5731_vm5, %v5787_v60  ;;  %4263 = vmatmul.mubr.msk.f32.gmra.mrb[6].mxu1 %vm5731_vm5, %v5787_v60  ;;  %v771_v62 = vadd.s32 8, %v5487_v45  ;;  %v5903_v45 = vpack.c.bf16 %v3518_v44, %v3517_v41  ;;  %v5966_v44 = vsel %vm5652_vm12, %v5663_v3, 0.0 }
 0x126   : > { %v4034_v13 = vpop.f32.mrb[16].mxu0  ;;  %4792 = vmatpush3.bf16.msra.mxu1 %v4789_v38  ;;  %4704 = vmatpush3.bf16.msra.mxu0 %v4701_v40  ;;  %v6970_v38 = vmov 0  ;;  %v6972_v40 = vmov 0 }
 0x127   : > { %v5828_v15 = vadd.f32 %v4034_v13, %v5511_v51  ;;  %v664_v16 = vpop.f32.mrb[17].mxu0  ;;  %4100 = vmatprep.mubr.msk.f32.mxu0 %vm5796_vm1, %v5818_v12  ;;  %4265 = vmatprep.mubr.msk.f32.mxu1 %vm5796_vm1, %v5818_v12  ;;  %v6971_v38 = vsel %vm5866_vm6, 4294967295, %v6970_v38  ;;  %v6973_v40 = vsel %vm5870_vm7, 4294967295, %v6972_v40  ;;  %vm785_vm13 = vcmp.ge.s32.totalorder %v771_v62, 1 }
 0x128   : > { %v665_v24 = vadd.f32 %v5511_v51, %v664_v16  ;;  %4794 = vmatprep.subr.bf16.mxu1 %v4793_v2  ;;  %4706 = vmatprep.subr.bf16.mxu0 %v4705_v4  ;;  %vm795_vm2 = vcmp.le.s32.totalorder %v771_v62, 16  ;;  %v640_v16 = vadd.f32 %v5719_v21, %v5511_v51  ;;  %v3457_v62 = vld [vmem:[%s6887_s4 + $0x120] sm:$0xff] }
 0x129   : > { %vm5934_vm1 = vmand %vm785_vm13, %vm795_vm2  ;;  %vm6979_vm2 = vcmp.ge.s32.totalorder %v5489_v46, 1  ;;  %v655_v46 = vadd.f32 %v5511_v51, %v5790_v63  ;;  %v6062_v63 = vsel %vm5755_vm8, %v5784_v56, 0.0 }
 0x12a   : > { %v5851_v30 = vmax.f32 %v665_v24, 0.0  ;;  %v4037_v31 = vpop.f32.mrb[18].mxu0  ;;  %4796 = vmatpush3.bf16.msra.mxu1 %v4793_v2  ;;  %4708 = vmatpush3.bf16.msra.mxu0 %v4705_v4  ;;  %v625_v4 = vadd.f32 %v5511_v51, %v5669_v7  ;;  %v3582_v2 = vld [vmem:[%s6887_s4 + $0x408] sm:$0xff] }
 0x12b   : > { %v680_v32 = vadd.f32 %v4037_v31, %v5511_v51  ;;  %v674_v34 = vpop.f32.mrb[19].mxu0  ;;  %4798 = vmatprep.subr.bf16.mxu1 %v4797_v19  ;;  %4710 = vmatprep.subr.bf16.mxu0 %v5836_v22  ;;  %v3456_v31 = vld [vmem:[%s6887_s4 + $0x118] sm:$0xff] }
 0x12c   : > { %6969 = vst [vmem:[#allocation15_spill] sm:$0xff] %v5851_v30  ;;  %v675_v36 = vadd.f32 %v5511_v51, %v674_v34  ;;  %4101 = vmatmul.mubr.msk.f32.gmra.mrb[40].mxu0 %vm5768_vm15, %v5851_v30  ;;  %4266 = vmatmul.mubr.msk.f32.gmra.mrb[8].mxu1 %vm5768_vm15, %v5851_v30  ;;  %v741_v14 = vmax.f32 %v625_v4, 0.0  ;;  %v4713_v41 = vpack.c.bf16 %v3456_v31, %v3455_v26  ;;  %v3458_v4 = vld [vmem:[%s6887_s4 + $0x128] sm:$0xff] }
 0x12d   : > { %v5882_v55 = vmax.f32 %v680_v32, 0.0 }
 0x12e   : > { %v5880_v47 = vmax.f32 %v675_v36, 0.0  ;;  %v4040_v54 = vpop.f32.mrb[20].mxu0  ;;  %4800 = vmatpush3.bf16.msra.mxu1 %v4797_v19 }
 0x12f   : > { %v690_v58 = vadd.f32 %v4040_v54, %v5511_v51  ;;  %v684_v59 = vpop.f32.mrb[21].mxu0  ;;  %4802 = vmatprep.subr.bf16.mxu1 %v4801_v35  ;;  %v5971_v54 = vsel %vm5616_vm9, %v5666_v43, 0.0  ;;  %v750_v43 = vmax.f32 %v5828_v15, 0.0  ;;  %v6124_v15 = vsel %vm5768_vm15, %v5851_v30, 0.0 }
 0x130   : > { %v5887_v1 = vadd.f32 %v5511_v51, %v684_v59  ;;  %4103 = vmatprep.mubr.msk.f32.mxu0 %vm5866_vm6, %v5880_v47  ;;  %4268 = vmatprep.mubr.msk.f32.mxu1 %vm5866_vm6, %v5880_v47  ;;  %vm6976_vm6 = vcmp.le.s32.totalorder %v5518_v53, 16 }
 0x131   : > { %v5907_v5 = vmax.f32 %v690_v58, 0.0  ;;  %4104 = vmatmul.mubr.msk.f32.gmra.mrb[42].mxu0 %vm5847_vm14, %v5882_v55  ;;  %4269 = vmatmul.mubr.msk.f32.gmra.mrb[10].mxu1 %vm5847_vm14, %v5882_v55  ;;  %vm851_vm14 = vmand %vm5616_vm9, %vm6976_vm6 }
 0x132   : > { %v4043_v6 = vpop.f32.mrb[22].mxu0  ;;  %4804 = vmatpush3.bf16.msra.mxu1 %v4801_v35  ;;  %v5952_v35 = vsel %vm851_vm14, %v741_v14, 0.0  ;;  %vm5959_vm6 = vmand %vm5934_vm1, %vm6979_vm2  ;;  %vm6982_vm14 = vcmp.le.s32.totalorder %v5518_v53, 16  ;;  %v3519_v14 = vld [vmem:[%s6887_s4 + $0x290] sm:$0xff] }
 0x133   : > { %v5916_v9 = vadd.f32 %v4043_v6, %v5511_v51  ;;  %v694_v13 = vpop.f32.mrb[23].mxu0  ;;  %4106 = vmatprep.mubr.msk.f32.mxu0 %vm5899_vm11, %v5907_v5  ;;  %4271 = vmatprep.mubr.msk.f32.mxu1 %vm5899_vm11, %v5907_v5  ;;  %v5986_v6 = vsel %vm5638_vm10, %v5748_v33, 0.0  ;;  %vm5992_vm13 = vmand %vm5638_vm10, %vm6982_vm14  ;;  %v3460_v33 = vld [vmem:[%s6887_s4 + $0x138] sm:$0xff] }
 0x134   : > { %v695_v7 = vadd.f32 %v5511_v51, %v694_v13  ;;  %4806 = vmatprep.subr.bf16.mxu1 %v5903_v45  ;;  %vm6986_vm2 = vmmov %vm6982_vm14 }
 0x135   : > { %vm6050_vm14 = vmand %vm5731_vm5, %vm6986_vm2 }
 0x136   : > { %v5932_v19 = vmax.f32 %v695_v7, 0.0  ;;  %v4046_v24 = vpop.f32.mrb[24].mxu0 }
 0x137   : > { %v704_v32 = vpop.f32.mrb[25].mxu0  ;;  %v710_v34 = vadd.f32 %v4046_v24, %v5511_v51  ;;  %v6008_v24 = vsel %vm5675_vm0, %v5707_v18, 0.0  ;;  %v3522_v18 = vld [vmem:[%s6887_s4 + $0x2a8] sm:$0xff] }
 0x138   : > { %v705_v21 = vadd.f32 %v5511_v51, %v704_v32  ;;  %4107 = vmatmul.mubr.msk.f32.gmra.mrb[44].mxu0 %vm5870_vm7, %v5932_v19  ;;  %4272 = vmatmul.mubr.msk.f32.gmra.mrb[12].mxu1 %vm5870_vm7, %v5932_v19  ;;  %v1115_v32 = vrot.slane %v5966_v44, 1 }
 0x139   : > { %4141 = vmatprep.mubr.f32.mxu0 %v5593_v27  ;;  %v744_v27 = vmax.f32 %v640_v16, 0.0  ;;  %v3520_v16 = vld [vmem:[%s6887_s4 + $0x298] sm:$0xff]  ;;  %v6010_v26 = vmax.f32 %v710_v34, 0.0  ;;  %v1118_v34 = vrot.slane %v5952_v35, 1 }
 0x13a   : > { %v5975_v58 = vmax.f32 %v705_v21, 0.0  ;;  %v4049_v59 = vpop.f32.mrb[26].mxu0  ;;  %v1116_v21 = vrot.slane %v5971_v54, 1 }
 0x13b   : > { %v5997_v13 = vadd.f32 %v4049_v59, %v5511_v51  ;;  %v714_v7 = vpop.f32.mrb[27].mxu0  ;;  %v3459_v59 = vld [vmem:[%s6887_s4 + $0x130] sm:$0xff]  ;;  %v6040_v57 = vsel %vm5992_vm13, %v744_v27, 0.0  ;;  %vm6990_vm13 = vcmask 1046528  }
 0x13c   : > { %v6013_v31 = vadd.f32 %v5511_v51, %v714_v7  ;;  %4142 = vmatmul.mubr.f32.vlgmr.msra.gmra.mrb[30].mxu0 %v5624_v50  ;;  %4274 = vmatprep.mubr.msk.f32.mxu1 %vm5959_vm6, %v5975_v58  ;;  %v4717_v50 = vpack.c.bf16 %v3458_v4, %v3457_v62  ;;  %v1121_v7 = vrot.slane %v5986_v6, 1  ;;  %v4809_v62 = vpack.c.bf16 %v3520_v16, %v3519_v14 }
 0x13d   : > { %6985 = vst [vmem:[#allocation16_spill] sm:$0xff] %v5997_v13  ;;  %4144 = vmatprep.mubr.f32.mxu0 %v5683_v10  ;;  %4712 = vmatpush3.bf16.msra.mxu0 %v5836_v22  ;;  %v747_v22 = vmax.f32 %v655_v46, 0.0  ;;  %v1120_v4 = vrot.slane %v6008_v24, 1  ;;  %v6989_v27 = vmax.f32 %v5997_v13, 0.0  ;;  %v6067_v14 = vsel %vm5731_vm5, %v5787_v60, 0.0  ;;  %vm6995_vm5 = vmmov %vm6990_vm13 }
 0x13e   : > { %4275 = vmatmul.mubr.msk.f32.gmra.mrb[14].mxu1 %vm5934_vm1, %v6010_v26  ;;  %4714 = vmatprep.subr.bf16.mxu0 %v4713_v41  ;;  %v4052_v39 = vpop.f32.mrb[28].mxu0  ;;  %v6072_v49 = vsel %vm6990_vm13, %v1115_v32, %v1116_v21 }
 0x13f   : > { %v900_v46 = vsel %vm5501_vm4, %v6989_v27, 0.0  ;;  %4309 = vmatprep.mubr.f32.mxu1 %v5683_v10  ;;  %v730_v16 = vadd.f32 %v4052_v39, %v5511_v51  ;;  %v724_v61 = vpop.f32.mrb[29].mxu0  ;;  %6991 = vst [vmem:[#allocation17_spill] sm:$0xff] %v6072_v49  ;;  %v4721_v27 = vpack.c.bf16 %v3460_v33, %v3459_v59  ;;  %v6074_v10 = vpack.c.bf16 %v3522_v18, %v3521_v8  ;;  %vm6080_vm4 = vmand %vm5493_vm3, %vm6986_vm2 }
 0x140   : > { %4145 = vmatmul.mubr.f32.gmra.mrb[32].mxu0 %v5686_v11  ;;  %v6085_v23 = vadd.f32 %v5511_v51, %v724_v61  ;;  %v1123_v39 = vrot.slane %v6040_v57, 1  ;;  %v6090_v33 = vsel %vm6990_vm13, %v1116_v21, %v1118_v34  ;;  %v6093_v8 = vsel %vm6995_vm5, %v1120_v4, %v1121_v7  ;;  %v3462_v21 = vld [vmem:[%s6887_s4 + $0x148] sm:$0xff]  ;;  %v3524_v4 = vld [vmem:[%s6887_s4 + $0x2b8] sm:$0xff]  ;;  %vm6996_vm5 = vmmov %vm6986_vm2 }
 0x141   : > { %4147 = vmatprep.mubr.f32.mxu0 %v6072_v49  ;;  %4716 = vmatpush3.bf16.msra.mxu0 %v4713_v41  ;;  %v762_v18 = vmax.f32 %v730_v16, 0.0  ;;  %v6097_v32 = vsel %vm6050_vm14, %v747_v22, 0.0  ;;  %v1125_v51 = vrot.slane %v6062_v63, 1  ;;  %v1126_v61 = vrot.slane %v6067_v14, 1  ;;  %v3461_v41 = vld [vmem:[%s6887_s4 + $0x140] sm:$0xff]  ;;  %vm6999_vm14 = vmmov %vm6990_vm13 }
 0x142   : > { %6994 = vst [vmem:[#allocation18_spill] sm:$0xff] %v6085_v23  ;;  %4310 = vmatmul.mubr.f32.vlgmr.msra.gmra.mrb[0].mxu1 %v5686_v11  ;;  %4718 = vmatprep.subr.bf16.mxu0 %v4717_v50  ;;  %v6917_v59 = vmax.f32 %v6085_v23, 0.0  ;;  %v2498_v34 = vrot.slane %v900_v46, 1  ;;  %v2715_v22 = vrot.slane %v900_v46, 2  ;;  %v3523_v11 = vld [vmem:[%s6887_s4 + $0x2b0] sm:$0xff]  ;;  %vm7000_vm2 = vnez %v6966_v0 }
 0x143   : > { %4808 = vmatpush3.bf16.msra.mxu1 %v5903_v45  ;;  %4312 = vmatprep.mubr.f32.mxu1 %v6072_v49  ;;  %v902_v16 = vsel %vm6080_vm4, %v762_v18, 0.0  ;;  %vm6134_vm4 = vmand %vm5768_vm15, %vm6996_vm5  ;;  %v4725_v18 = vpack.c.bf16 %v3462_v21, %v3461_v41  ;;  %v4817_v48 = vpack.c.bf16 %v3524_v4, %v3523_v11  ;;  %v6147_v23 = vsel %vm7000_vm2, %v5818_v12, 0.0 }
 0x144   : > { %4148 = vmatmul.mubr.f32.gmra.mrb[34].mxu0 %v6090_v33  ;;  %4810 = vmatprep.subr.bf16.mxu1 %v4809_v62  ;;  %v2501_v45 = vrot.slane %v902_v16, 1  ;;  %v2718_v46 = vrot.slane %v902_v16, 2  ;;  %v901_v49 = vsel %vm5493_vm3, %v6917_v59, 0.0  ;;  %v1128_v16 = vrot.slane %v6097_v32, 1  ;;  %vm7002_vm5 = vmmov %vm6990_vm13 }
 0x145   : > { %4150 = vmatprep.mubr.f32.mxu0 %v6093_v8  ;;  %4720 = vmatpush3.bf16.msra.mxu0 %v4717_v50  ;;  %v2499_v30 = vrot.slane %v901_v49, 1  ;;  %v2716_v60 = vrot.slane %v901_v49, 2  ;;  %v6142_v59 = vsel %vm6999_vm14, %v1121_v7, %v1123_v39  ;;  %v1131_v50 = vrot.slane %v6124_v15, 1  ;;  %v3463_v49 = vld [vmem:[%s6887_s4 + $0x150] sm:$0xff]  ;;  %v3464_v7 = vld [vmem:[%s6887_s4 + $0x158] sm:$0xff]  ;;  %vm7006_vm3 = vmmov %vm7002_vm5 }
 0x146   : > { %4313 = vmatmul.mubr.f32.gmra.mrb[2].mxu1 %v6090_v33  ;;  %4722 = vmatprep.subr.bf16.mxu0 %v4721_v27  ;;  %vm7004_vm14 = vcmask 1045504   ;;  %v6168_v21 = vsel %vm6134_vm4, %v750_v43, 0.0  ;;  %v753_v11 = vmax.f32 %v5887_v1, 0.0  ;;  %v6174_v4 = vsel %vm7006_vm3, %v1125_v51, %v1126_v61 }
 0x147   : > { %4812 = vmatpush3.bf16.msra.mxu1 %v4809_v62  ;;  %4315 = vmatprep.mubr.f32.mxu1 %v6093_v8  ;;  %v6158_v39 = vsel %vm6990_vm13, %v2498_v34, %v2499_v30  ;;  %v6161_v41 = vsel %vm7002_vm5, %v2499_v30, %v2501_v45  ;;  %v6164_v62 = vsel %vm7004_vm14, %v2715_v22, %v2716_v60  ;;  %v3525_v30 = vld [vmem:[%s6887_s4 + $0x2c0] sm:$0xff]  ;;  %v3526_v34 = vld [vmem:[%s6887_s4 + $0x2c8] sm:$0xff]  ;;  %vm7007_vm13 = vmmov %vm7004_vm14  ;;  %vm7009_vm4 = vcmp.le.s32.totalorder %v5518_v53, 16 }
 0x148   : > { %7001 = vst [vmem:[#allocation19_spill] sm:$0xff] %v6158_v39  ;;  %7003 = vst [vmem:[#allocation20_spill] sm:$0xff] %v6161_v41  ;;  %4151 = vmatmul.mubr.f32.gmra.mrb[36].mxu0 %v6142_v59  ;;  %4814 = vmatprep.subr.bf16.mxu1 %v6074_v10  ;;  %v6183_v43 = vsel %vm7007_vm13, %v2716_v60, %v2718_v46  ;;  %vm7010_vm5 = vnez %v6968_v29  ;;  %v1130_v51 = vrot.slane %v6147_v23, 1  ;;  %vm7013_vm3 = vnez %v6971_v38  ;;  %v3467_v39 = vld [vmem:[%s6887_s4 + $0x170] sm:$0xff] }
 0x149   : > { %7005 = vst [vmem:[#allocation21_spill] sm:$0xff] %v6164_v62  ;;  %7008 = vst [vmem:[#allocation22_spill] sm:$0xff] %v6183_v43  ;;  %4153 = vmatprep.mubr.f32.mxu0 %v6174_v4  ;;  %4724 = vmatpush3.bf16.msra.mxu0 %v4721_v27  ;;  %v6198_v22 = vsel %vm7013_vm3, %v5880_v47, 0.0  ;;  %v6203_v60 = vsel %vm7010_vm5, %v5882_v55, 0.0  ;;  %v4729_v45 = vpack.c.bf16 %v3464_v7, %v3463_v49  ;;  %v1133_v46 = vrot.slane %v6168_v21, 1  ;;  %v3465_v62 = vld [vmem:[%s6887_s4 + $0x160] sm:$0xff] }
 0x14a   : > { %vm6189_vm14 = vmand %vm7010_vm5, %vm7009_vm4  ;;  %4316 = vmatmul.mubr.f32.gmra.mrb[4].mxu1 %v6142_v59  ;;  %4726 = vmatprep.subr.bf16.mxu0 %v4725_v18  ;;  %vm7014_vm13 = vcmask 1046528   ;;  %v4821_v43 = vpack.c.bf16 %v3526_v34, %v3525_v30  ;;  %v3466_v49 = vld [vmem:[%s6887_s4 + $0x168] sm:$0xff]  ;;  %v756_v7 = vmax.f32 %v5916_v9, 0.0  ;;  %v3527_v9 = vld [vmem:[%s6887_s4 + $0x2d0] sm:$0xff]  ;;  %v6247_v34 = vsel %vm5870_vm7, %v5932_v19, 0.0 }
 0x14b   : > { %4816 = vmatpush3.bf16.msra.mxu1 %v6074_v10  ;;  %4318 = vmatprep.mubr.f32.mxu1 %v6174_v4  ;;  %v6210_v27 = vsel %vm7014_vm13, %v1126_v61, %v1128_v16  ;;  %vm7015_vm4 = vmmov %vm7014_vm13  ;;  %v6223_v10 = vsel %vm6189_vm14, %v753_v11, 0.0  ;;  %v1135_v61 = vrot.slane %v6198_v22, 1  ;;  %v1136_v16 = vrot.slane %v6203_v60, 1  ;;  %v3528_v11 = vld [vmem:[%s6887_s4 + $0x2d8] sm:$0xff]  ;;  %v3579_v38 = vld [vmem:[%s6887_s4 + $0x3f0] sm:$0xff] }
 0x14c   : > { %v6213_v13 = vsel %vm7015_vm4, %v1130_v51, %v1131_v50  ;;  %4154 = vmatmul.mubr.f32.gmra.mrb[38].mxu0 %v6210_v27  ;;  %4818 = vmatprep.subr.bf16.mxu1 %v4817_v48  ;;  %vm7017_vm13 = vcmp.le.s32.totalorder %v5518_v53, 16  ;;  %v4733_v1 = vpack.c.bf16 %v3466_v49, %v3465_v62  ;;  %v1138_v51 = vrot.slane %v6223_v10, 1  ;;  %v3468_v62 = vld [vmem:[%s6887_s4 + $0x178] sm:$0xff] }
 0x14d   : > { %7016 = vst [vmem:[#allocation23_spill] sm:$0xff] %v6213_v13  ;;  %vm6233_vm4 = vmand %vm5870_vm7, %vm7017_vm13  ;;  %4156 = vmatprep.mubr.f32.mxu0 %v6213_v13  ;;  %4728 = vmatpush3.bf16.msra.mxu0 %v4725_v18  ;;  %vm7020_vm14 = vcmask 1046528   ;;  %v6258_v41 = vsel %vm5899_vm11, %v5907_v5, 0.0  ;;  %v1141_v49 = vrot.slane %v6247_v34, 1  ;;  %v759_v30 = vmax.f32 %v6013_v31, 0.0 }
 0x14e   : > { %4319 = vmatmul.mubr.f32.gmra.mrb[6].mxu1 %v6210_v27  ;;  %4730 = vmatprep.subr.bf16.mxu0 %v4729_v45  ;;  %v6253_v18 = vsel %vm7020_vm14, %v1131_v50, %v1133_v46  ;;  %vm7022_vm13 = vmmov %vm7020_vm14  ;;  %v4825_v46 = vpack.c.bf16 %v3528_v11, %v3527_v9  ;;  %v4737_v9 = vpack.c.bf16 %v3468_v62, %v3467_v39  ;;  %v6298_v31 = vsel %vm5959_vm6, %v5975_v58, 0.0 }
 0x14f   : > { %4820 = vmatpush3.bf16.msra.mxu1 %v4817_v48  ;;  %4321 = vmatprep.mubr.f32.mxu1 %v6213_v13  ;;  %7021 = vst [vmem:[#allocation24_spill] sm:$0xff] %v6253_v18  ;;  %v6268_v48 = vsel %vm6233_vm4, %v756_v7, 0.0  ;;  %v6272_v50 = vsel %vm7022_vm13, %v1135_v61, %v1136_v16  ;;  %v3529_v13 = vld [vmem:[%s6887_s4 + $0x2e0] sm:$0xff]  ;;  %v3530_v7 = vld [vmem:[%s6887_s4 + $0x2e8] sm:$0xff]  ;;  %v1140_v61 = vrot.slane %v6258_v41, 1  ;;  %vm7023_vm4 = vcmp.le.s32.totalorder %v5518_v53, 16  ;;  %vm7024_vm7 = vmmov %vm7022_vm13 }
 0x150   : > { %4157 = vmatmul.mubr.f32.gmra.mrb[40].mxu0 %v6253_v18  ;;  %4822 = vmatprep.subr.bf16.mxu1 %v4821_v43  ;;  %v1143_v11 = vrot.slane %v6268_v48, 1  ;;  %vm869_vm14 = vmand %vm5934_vm1, %vm7023_vm4  ;;  %v6302_v39 = vsel %vm7022_vm13, %v1136_v16, %v1138_v51  ;;  %v4829_v53 = vpack.c.bf16 %v3530_v7, %v3529_v13  ;;  %v1851_v51 = vrot.slane %v6298_v31, 1 }
 0x151   : > { %4159 = vmatprep.mubr.f32.mxu0 %v6272_v50  ;;  %4732 = vmatpush3.bf16.msra.mxu0 %v4729_v45  ;;  %v6289_v45 = vsel %vm5934_vm1, %v6010_v26, 0.0  ;;  %v6306_v62 = vsel %vm7024_vm7, %v1140_v61, %v1141_v49  ;;  %v6315_v16 = vsel %vm869_vm14, %v759_v30, 0.0  ;;  %v3533_v61 = vld [vmem:[%s6887_s4 + $0x300] sm:$0xff]  ;;  %vm7025_vm4 = vmmov %vm7024_vm7  ;;  %vm7027_vm13 = vcmask 1045504  }
 0x152   : > { %4322 = vmatmul.mubr.f32.gmra.mrb[8].mxu1 %v6253_v18  ;;  %4734 = vmatprep.subr.bf16.mxu0 %v4733_v1  ;;  %v3531_v18 = vld [vmem:[%s6887_s4 + $0x2f0] sm:$0xff]  ;;  %v1852_v13 = vrot.slane %v6289_v45, 1  ;;  %v1854_v30 = vrot.slane %v6315_v16, 1  ;;  %vm7026_vm14 = vmmov %vm7025_vm4 }
 0x153   : > { %4824 = vmatpush3.bf16.msra.mxu1 %v4821_v43  ;;  %4324 = vmatprep.mubr.f32.mxu1 %v6272_v50  ;;  %v3532_v43 = vld [vmem:[%s6887_s4 + $0x2f8] sm:$0xff] }
 0x154   : > { %4160 = vmatmul.mubr.f32.gmra.mrb[42].mxu0 %v6302_v39  ;;  %4826 = vmatprep.subr.bf16.mxu1 %v4825_v46  ;;  %v4833_v7 = vpack.c.bf16 %v3532_v43, %v3531_v18  ;;  %v1382_v18 = vrot.slane %v5966_v44, 2  ;;  %v3535_v43 = vld [vmem:[%s6887_s4 + $0x310] sm:$0xff] }
 0x155   : > { %4162 = vmatprep.mubr.f32.mxu0 %v6306_v62  ;;  %4736 = vmatpush3.bf16.msra.mxu0 %v4733_v1  ;;  %v6322_v1 = vsel %vm7024_vm7, %v1141_v49, %v1143_v11  ;;  %v6335_v49 = vsel %vm7025_vm4, %v1851_v51, %v1852_v13  ;;  %v6343_v11 = vsel %vm7026_vm14, %v1852_v13, %v1854_v30  ;;  %v1388_v51 = vrot.slane %v5986_v6, 2  ;;  %v3537_v13 = vld [vmem:[%s6887_s4 + $0x320] sm:$0xff]  ;;  %vm7028_vm7 = vmmov %vm7027_vm13 }
 0x156   : > { %4325 = vmatmul.mubr.f32.gmra.mrb[10].mxu1 %v6302_v39  ;;  %4738 = vmatprep.subr.bf16.mxu0 %v4737_v9  ;;  %vm7029_vm4 = vmmov %vm7028_vm7 }
 0x157   : > { %4828 = vmatpush3.bf16.msra.mxu1 %v4825_v46  ;;  %4327 = vmatprep.mubr.f32.mxu1 %v6306_v62  ;;  %v3534_v46 = vld [vmem:[%s6887_s4 + $0x308] sm:$0xff]  ;;  %vm7030_vm14 = vmmov %vm7029_vm4 }
 0x158   : > { %4163 = vmatmul.mubr.f32.gmra.mrb[44].mxu0 %v6322_v1  ;;  %4830 = vmatprep.subr.bf16.mxu1 %v4829_v53 }
 0x159   : > { %4740 = vmatpush3.bf16.msra.mxu0 %v4737_v9  ;;  %4197 = vmatprep.mubr.f32.mxu0 %v5596_v28  ;;  %v4837_v28 = vpack.c.bf16 %v3534_v46, %v3533_v61  ;;  %v1383_v9 = vrot.slane %v5971_v54, 2  ;;  %v1392_v46 = vrot.slane %v6062_v63, 2 }
 0x15a   : > { %4328 = vmatmul.mubr.f32.gmra.mrb[12].mxu1 %v6322_v1 }
 0x15b   : > { %4832 = vmatpush3.bf16.msra.mxu1 %v4829_v53  ;;  %4330 = vmatprep.mubr.f32.mxu1 %v6335_v49  ;;  %v3536_v53 = vld [vmem:[%s6887_s4 + $0x318] sm:$0xff]  ;;  %v6356_v44 = vsel %vm7027_vm13, %v1382_v18, %v1383_v9  ;;  %vm7031_vm13 = vmmov %vm7029_vm4 }
 0x15c   : > { %4198 = vmatmul.mubr.f32.vlgmr.msra.gmra.mrb[30].mxu0 %v5627_v52  ;;  %4834 = vmatprep.subr.bf16.mxu1 %v4833_v7  ;;  %v1385_v52 = vrot.slane %v5952_v35, 2  ;;  %v4841_v54 = vpack.c.bf16 %v3536_v53, %v3535_v43  ;;  %v3538_v35 = vld [vmem:[%s6887_s4 + $0x328] sm:$0xff]  ;;  %v1397_v53 = vrot.slane %v6147_v23, 2  ;;  %v3543_v23 = vld [vmem:[%s6887_s4 + $0x350] sm:$0xff] }
 0x15d   : > { %4200 = vmatprep.mubr.f32.mxu0 %v5705_v17  ;;  %v4845_v61 = vpack.c.bf16 %v3538_v35, %v3537_v13  ;;  %v3542_v43 = vld [vmem:[%s6887_s4 + $0x348] sm:$0xff]  ;;  %v1402_v13 = vrot.slane %v6198_v22, 2  ;;  %v1403_v35 = vrot.slane %v6203_v60, 2 }
 0x15e   : > { %4331 = vmatmul.mubr.f32.gmra.mrb[14].mxu1 %v6343_v11  ;;  %v6371_v6 = vsel %vm7028_vm7, %v1383_v9, %v1385_v52  ;;  %v1398_v9 = vrot.slane %v6124_v15, 2  ;;  %v1400_v52 = vrot.slane %v6168_v21, 2  ;;  %vm7032_vm7 = vmmov %vm7029_vm4  ;;  %v3544_v21 = vld [vmem:[%s6887_s4 + $0x358] sm:$0xff] }
 0x15f   : > { %4836 = vmatpush3.bf16.msra.mxu1 %v4833_v7  ;;  %4365 = vmatprep.mubr.f32.mxu1 %v5705_v17  ;;  %v1387_v17 = vrot.slane %v6008_v24, 2  ;;  %v1390_v7 = vrot.slane %v6040_v57, 2  ;;  %v3539_v57 = vld [vmem:[%s6887_s4 + $0x330] sm:$0xff]  ;;  %v3540_v24 = vld [vmem:[%s6887_s4 + $0x338] sm:$0xff] }
 0x160   : > { %4201 = vmatmul.mubr.f32.gmra.mrb[32].mxu0 %v5717_v20  ;;  %4838 = vmatprep.subr.bf16.mxu1 %v4837_v28  ;;  %v4849_v18 = vpack.c.bf16 %v3540_v24, %v3539_v57  ;;  %v1410_v57 = vrot.slane %v6268_v48, 2  ;;  %v3548_v48 = vld [vmem:[%s6887_s4 + $0x378] sm:$0xff] }
 0x161   : > { %4203 = vmatprep.mubr.f32.mxu0 %v6356_v44  ;;  %v6375_v30 = vsel %vm7029_vm4, %v1387_v17, %v1388_v51  ;;  %v6390_v63 = vsel %vm7030_vm14, %v1388_v51, %v1390_v7  ;;  %v1405_v17 = vrot.slane %v6223_v10, 2  ;;  %vm7033_vm14 = vmmov %vm7029_vm4  ;;  %v4857_v7 = vpack.c.bf16 %v3544_v21, %v3543_v23  ;;  %v3545_v10 = vld [vmem:[%s6887_s4 + $0x360] sm:$0xff]  ;;  %v7055_v23 = vld [vmem:[#allocation18_spill] sm:$0xff] }
 0x162   : > { %4366 = vmatmul.mubr.f32.vlgmr.msra.gmra.mrb[0].mxu1 %v5717_v20  ;;  %v1393_v20 = vrot.slane %v6067_v14, 2  ;;  %v6428_v22 = vsel %vm7033_vm14, %v1398_v9, %v1400_v52  ;;  %vm7036_vm14 = vmmov %vm7029_vm4  ;;  %v3565_v52 = vld [vmem:[%s6887_s4 + $0x380] sm:$0xff] }
 0x163   : > { %4840 = vmatpush3.bf16.msra.mxu1 %v4837_v28  ;;  %4368 = vmatprep.mubr.f32.mxu1 %v6356_v44  ;;  %v1395_v28 = vrot.slane %v6097_v32, 2  ;;  %v3541_v32 = vld [vmem:[%s6887_s4 + $0x340] sm:$0xff] }
 0x164   : > { %4204 = vmatmul.mubr.f32.gmra.mrb[34].mxu0 %v6371_v6  ;;  %4842 = vmatprep.subr.bf16.mxu1 %v4841_v54  ;;  %v6394_v14 = vsel %vm7031_vm13, %v1392_v46, %v1393_v20  ;;  %v4853_v51 = vpack.c.bf16 %v3542_v43, %v3541_v32  ;;  %vm7034_vm13 = vmmov %vm7029_vm4  ;;  %v3546_v46 = vld [vmem:[%s6887_s4 + $0x368] sm:$0xff] }
 0x165   : > { %4206 = vmatprep.mubr.f32.mxu0 %v6375_v30  ;;  %v6409_v15 = vsel %vm7032_vm7, %v1393_v20, %v1395_v28  ;;  %v6432_v60 = vsel %vm7034_vm13, %v1402_v13, %v1403_v35  ;;  %v1407_v20 = vrot.slane %v6258_v41, 2  ;;  %vm7035_vm7 = vmmov %vm7029_vm4  ;;  %v4861_v28 = vpack.c.bf16 %v3546_v46, %v3545_v10  ;;  %v3547_v41 = vld [vmem:[%s6887_s4 + $0x370] sm:$0xff]  ;;  %v7042_v46 = vld [vmem:[#allocation11_spill] sm:$0xff] }
 0x166   : > { %4369 = vmatmul.mubr.f32.gmra.mrb[2].mxu1 %v6371_v6  ;;  %v4865_v43 = vpack.c.bf16 %v3548_v48, %v3547_v41  ;;  %vm7037_vm13 = vmmov %vm7029_vm4  ;;  %v3567_v13 = vld [vmem:[%s6887_s4 + $0x390] sm:$0xff]  ;;  %v7044_v41 = vld [vmem:[#allocation13_spill] sm:$0xff] }
 0x167   : > { %4844 = vmatpush3.bf16.msra.mxu1 %v4841_v54  ;;  %4371 = vmatprep.mubr.f32.mxu1 %v6375_v30  ;;  %v6413_v54 = vsel %vm7029_vm4, %v1397_v53, %v1398_v9  ;;  %v2069_v9 = vrot.slane %v6289_v45, 2  ;;  %v2071_v53 = vrot.slane %v6315_v16, 2  ;;  %v3566_v45 = vld [vmem:[%s6887_s4 + $0x388] sm:$0xff]  ;;  %v3593_v48 = vld [vmem:[%s6887_s4 + $0x460] sm:$0xff] }
 0x168   : > { %4207 = vmatmul.mubr.f32.gmra.mrb[36].mxu0 %v6390_v63  ;;  %4846 = vmatprep.subr.bf16.mxu1 %v4845_v61 }
 0x169   : > { %4209 = vmatprep.mubr.f32.mxu0 %v6394_v14 }
 0x16a   : > { %4372 = vmatmul.mubr.f32.gmra.mrb[4].mxu1 %v6390_v63 }
 0x16b   : > { %4848 = vmatpush3.bf16.msra.mxu1 %v4845_v61  ;;  %4374 = vmatprep.mubr.f32.mxu1 %v6394_v14  ;;  %v1408_v61 = vrot.slane %v6247_v34, 2  ;;  %v6447_v34 = vsel %vm7035_vm7, %v1403_v35, %v1405_v17  ;;  %vm7038_vm7 = vmmov %vm7029_vm4  ;;  %v3568_v35 = vld [vmem:[%s6887_s4 + $0x398] sm:$0xff]  ;;  %v3569_v17 = vld [vmem:[%s6887_s4 + $0x3a0] sm:$0xff] }
 0x16c   : > { %4210 = vmatmul.mubr.f32.gmra.mrb[38].mxu0 %v6409_v15  ;;  %4850 = vmatprep.subr.bf16.mxu1 %v4849_v18  ;;  %v6481_v16 = vsel %vm7038_vm7, %v2069_v9, %v2071_v53  ;;  %v4873_v21 = vpack.c.bf16 %v3568_v35, %v3567_v13  ;;  %v7046_v53 = vld [vmem:[#allocation14_spill] sm:$0xff]  ;;  %v3578_v13 = vld [vmem:[%s6887_s4 + $0x3e8] sm:$0xff]  ;;  %v3584_v35 = vld [vmem:[%s6887_s4 + $0x418] sm:$0xff] }
 0x16d   : > { %4212 = vmatprep.mubr.f32.mxu0 %v6413_v54  ;;  %v6451_v24 = vsel %vm7029_vm4, %v1407_v20, %v1408_v61  ;;  %v6465_v32 = vsel %vm7036_vm14, %v1408_v61, %v1410_v57  ;;  %v7040_v61 = vld [vmem:[#allocation9_spill] sm:$0xff]  ;;  %v3571_v57 = vld [vmem:[%s6887_s4 + $0x3b0] sm:$0xff]  ;;  %v3588_v20 = vld [vmem:[%s6887_s4 + $0x438] sm:$0xff] }
 0x16e   : > { %4375 = vmatmul.mubr.f32.gmra.mrb[6].mxu1 %v6409_v15 }
 0x16f   : > { %4852 = vmatpush3.bf16.msra.mxu1 %v4849_v18  ;;  %4377 = vmatprep.mubr.f32.mxu1 %v6413_v54  ;;  %v2068_v18 = vrot.slane %v6298_v31, 2 }
 0x170   : > { %4213 = vmatmul.mubr.f32.gmra.mrb[40].mxu0 %v6428_v22  ;;  %4854 = vmatprep.subr.bf16.mxu1 %v4853_v51 }
 0x171   : > { %4215 = vmatprep.mubr.f32.mxu0 %v6432_v60  ;;  %v6477_v31 = vsel %vm7037_vm13, %v2068_v18, %v2069_v9  ;;  %v3573_v9 = vld [vmem:[%s6887_s4 + $0x3c0] sm:$0xff] }
 0x172   : > { %4378 = vmatmul.mubr.f32.gmra.mrb[8].mxu1 %v6428_v22 }
 0x173   : > { %4856 = vmatpush3.bf16.msra.mxu1 %v4853_v51  ;;  %4380 = vmatprep.mubr.f32.mxu1 %v6432_v60  ;;  %v4869_v51 = vpack.c.bf16 %v3566_v45, %v3565_v52  ;;  %v7047_v52 = vld [vmem:[#allocation12_spill] sm:$0xff]  ;;  %v3576_v45 = vld [vmem:[%s6887_s4 + $0x3d8] sm:$0xff] }
 0x174   : > { %4216 = vmatmul.mubr.f32.gmra.mrb[42].mxu0 %v6447_v34  ;;  %4858 = vmatprep.subr.bf16.mxu1 %v4857_v7 }
 0x175   : > { %4218 = vmatprep.mubr.f32.mxu0 %v6451_v24 }
 0x176   : > { %4381 = vmatmul.mubr.f32.gmra.mrb[10].mxu1 %v6447_v34 }
 0x177   : > { %4860 = vmatpush3.bf16.msra.mxu1 %v4857_v7  ;;  %4383 = vmatprep.mubr.f32.mxu1 %v6451_v24  ;;  %v3570_v7 = vld [vmem:[%s6887_s4 + $0x3a8] sm:$0xff] }
 0x178   : > { %4219 = vmatmul.mubr.f32.gmra.mrb[44].mxu0 %v6465_v32  ;;  %4862 = vmatprep.subr.bf16.mxu1 %v4861_v28 }
 0x17a   : > { %4384 = vmatmul.mubr.f32.gmra.mrb[12].mxu1 %v6465_v32 }
 0x17b   : > { %4864 = vmatpush3.bf16.msra.mxu1 %v4861_v28  ;;  %4386 = vmatprep.mubr.f32.mxu1 %v6477_v31  ;;  %v3572_v28 = vld [vmem:[%s6887_s4 + $0x3b8] sm:$0xff] }
 0x17c   : > { %4866 = vmatprep.subr.bf16.mxu1 %v4865_v43  ;;  %v4881_v18 = vpack.c.bf16 %v3572_v28, %v3571_v57  ;;  %v7060_v57 = vld [vmem:[#allocation23_spill] sm:$0xff] }
 0x17d   : > { %v3592_v28 = vld [vmem:[%s6887_s4 + $0x458] sm:$0xff] }
 0x17e   : > { %4387 = vmatmul.mubr.f32.gmra.mrb[14].mxu1 %v6481_v16 }
 0x17f   : > { %4868 = vmatpush3.bf16.msra.mxu1 %v4865_v43  ;;  %4421 = vmatprep.mubr.msk.f32.mxu1 %vm5652_vm12, %v5663_v3  ;;  %v4877_v3 = vpack.c.bf16 %v3570_v7, %v3569_v17  ;;  %v3574_v43 = vld [vmem:[%s6887_s4 + $0x3c8] sm:$0xff]  ;;  %v3585_v7 = vld [vmem:[%s6887_s4 + $0x420] sm:$0xff] }
 0x180   : > { %4870 = vmatprep.subr.bf16.mxu1 %v4869_v51  ;;  %v4885_v37 = vpack.c.bf16 %v3574_v43, %v3573_v9  ;;  %v3596_v43 = vld [vmem:[%s6887_s4 + $0x478] sm:$0xff] }
 0x182   : > { %4422 = vmatmul.mubr.msk.f32.vlgmr.msra.gmra.mrb[0].mxu1 %vm5616_vm9, %v7040_v61  ;;  %vm7048_vm9 = vnez %v7047_v52  ;;  %v3586_v61 = vld [vmem:[%s6887_s4 + $0x428] sm:$0xff] }
 0x183   : > { %4872 = vmatpush3.bf16.msra.mxu1 %v4869_v51  ;;  %4424 = vmatprep.mubr.msk.f32.mxu1 %vm5675_vm0, %v7042_v46  ;;  %v7049_v51 = vld [vmem:[#allocation15_spill] sm:$0xff]  ;;  %vm7058_vm0 = vnez %v7057_v25  ;;  %v4909_v10 = vpack.c.bf16 %v3586_v61, %v3585_v7  ;;  %v3587_v46 = vld [vmem:[%s6887_s4 + $0x430] sm:$0xff]  ;;  %v6713_v61 = vld [vmem:[%s6888_s5] ss:$0 sm:$0xff] }
 0x184   : > { %4874 = vmatprep.subr.bf16.mxu1 %v4873_v21 }
 0x186   : > { %4425 = vmatmul.mubr.msk.f32.gmra.mrb[2].mxu1 %vm5638_vm10, %v7044_v41  ;;  %vm7050_vm10 = vnez %v6973_v40  ;;  %v7051_v40 = vld [vmem:[#allocation16_spill] sm:$0xff] }
 0x187   : > { %4876 = vmatpush3.bf16.msra.mxu1 %v4873_v21  ;;  %4427 = vmatprep.mubr.msk.f32.mxu1 %vm5755_vm8, %v5784_v56  ;;  %v3575_v56 = vld [vmem:[%s6887_s4 + $0x3d0] sm:$0xff]  ;;  %v7056_v21 = vmax.f32 %v7055_v23, 0.0  ;;  %v7061_v41 = vld [vmem:[#allocation24_spill] sm:$0xff]  ;;  %vm7066_vm8 = vcmask 1046528  }
 0x188   : > { %4878 = vmatprep.subr.bf16.mxu1 %v4877_v3  ;;  %v4889_v0 = vpack.c.bf16 %v3576_v45, %v3575_v56  ;;  %v7064_v56 = vld [vmem:[#allocation21_spill] sm:$0xff] }
 0x18a   : > { %4428 = vmatmul.mubr.msk.f32.gmra.mrb[4].mxu1 %vm7048_vm9, %v7046_v53  ;;  %v7063_v53 = vld [vmem:[#allocation20_spill] sm:$0xff] }
 0x18b   : > { %4880 = vmatpush3.bf16.msra.mxu1 %v4877_v3  ;;  %4430 = vmatprep.mubr.msk.f32.mxu1 %vm7000_vm2, %v5818_v12  ;;  %v3577_v12 = vld [vmem:[%s6887_s4 + $0x3e0] sm:$0xff]  ;;  %v3590_v3 = vld [vmem:[%s6887_s4 + $0x448] sm:$0xff] }
 0x18c   : > { %4882 = vmatprep.subr.bf16.mxu1 %v4881_v18  ;;  %v4893_v42 = vpack.c.bf16 %v3578_v13, %v3577_v12  ;;  %v3001_v12 = vld [vmem:[%s6889_s6 + $0x70] sm:$0xff]  ;;  %v3002_v13 = vld [vmem:[%s6889_s6 + $0x78] sm:$0xff] }
 0x18e   : > { %4431 = vmatmul.mubr.msk.f32.gmra.mrb[6].mxu1 %vm5768_vm15, %v7049_v51  ;;  %v7065_v51 = vld [vmem:[#allocation22_spill] sm:$0xff]  ;;  %vm7067_vm15 = vmmov %vm7066_vm8 }
 0x18f   : > { %4884 = vmatpush3.bf16.msra.mxu1 %v4881_v18  ;;  %4433 = vmatprep.mubr.msk.f32.mxu1 %vm7013_vm3, %v5880_v47  ;;  %v3580_v47 = vld [vmem:[%s6887_s4 + $0x3f8] sm:$0xff]  ;;  %v3594_v18 = vld [vmem:[%s6887_s4 + $0x468] sm:$0xff] }
 0x190   : > { %4886 = vmatprep.subr.bf16.mxu1 %v4885_v37  ;;  %v4897_v29 = vpack.c.bf16 %v3580_v47, %v3579_v38  ;;  %v4925_v9 = vpack.c.bf16 %v3594_v18, %v3593_v48 }
 0x192   : > { %4434 = vmatmul.mubr.msk.f32.gmra.mrb[8].mxu1 %vm7010_vm5, %v5882_v55  ;;  %v3581_v55 = vld [vmem:[%s6887_s4 + $0x400] sm:$0xff] }
 0x193   : > { %4888 = vmatpush3.bf16.msra.mxu1 %v4885_v37  ;;  %4436 = vmatprep.mubr.msk.f32.mxu1 %vm5899_vm11, %v5907_v5  ;;  %v7052_v5 = vmax.f32 %v7051_v40, 0.0  ;;  %v4901_v36 = vpack.c.bf16 %v3582_v2, %v3581_v55 }
 0x194   : > { %4890 = vmatprep.subr.bf16.mxu1 %v4889_v0 }
 0x196   : > { %4437 = vmatmul.mubr.msk.f32.gmra.mrb[10].mxu1 %vm7050_vm10, %v5932_v19  ;;  %v7053_v19 = vld [vmem:[#allocation5_spill] sm:$0xff] }
 0x197   : > { %4892 = vmatpush3.bf16.msra.mxu1 %v4889_v0  ;;  %4439 = vmatprep.mubr.msk.f32.mxu1 %vm5959_vm6, %v5975_v58  ;;  %vm7054_vm12 = vnez %v7053_v19  ;;  %v3583_v58 = vld [vmem:[%s6887_s4 + $0x410] sm:$0xff] }
 0x198   : > { %4894 = vmatprep.subr.bf16.mxu1 %v4893_v42  ;;  %v4905_v17 = vpack.c.bf16 %v3584_v35, %v3583_v58 }
 0x19a   : > { %4440 = vmatmul.mubr.msk.f32.gmra.mrb[12].mxu1 %vm5934_vm1, %v6010_v26  ;;  %v7059_v26 = vld [vmem:[#allocation17_spill] sm:$0xff]  ;;  %vm7068_vm1 = vmmov %vm7066_vm8 }
 0x19b   : > { %4896 = vmatpush3.bf16.msra.mxu1 %v4893_v42  ;;  %4442 = vmatprep.mubr.msk.f32.mxu1 %vm7054_vm12, %v7052_v5  ;;  %v4961_v42 = vpack.c.bf16 %v3002_v13, %v3001_v12  ;;  %vm7069_vm11 = vmmov %vm7068_vm1 }
 0x19c   : > { %4898 = vmatprep.subr.bf16.mxu1 %v4897_v29  ;;  %vm7070_vm6 = vmmov %vm7068_vm1 }
 0x19d   : > { %vm7071_vm2 = vmmov %vm7068_vm1 }
 0x19e   : > { %4443 = vmatmul.mubr.msk.f32.gmra.mrb[14].mxu1 %vm7058_vm0, %v7056_v21  ;;  %vm7072_vm5 = vmmov %vm7068_vm1 }
 0x19f   : > { %4900 = vmatpush3.bf16.msra.mxu1 %v4897_v29  ;;  %4477 = vmatprep.mubr.f32.mxu1 %v7059_v26  ;;  %vm7073_vm3 = vmmov %vm7068_vm1 }
 0x1a0   : > { %4902 = vmatprep.subr.bf16.mxu1 %v4901_v36  ;;  %vm7074_vm4 = vmmov %vm7068_vm1 }
 0x1a1   : > { %vm7075_vm14 = vmmov %vm7068_vm1 }
 0x1a2   : > { %4478 = vmatmul.mubr.f32.vlgmr.msra.gmra.mrb[0].mxu1 %v6090_v33  ;;  %v4913_v33 = vpack.c.bf16 %v3588_v20, %v3587_v46  ;;  %vm7076_vm13 = vmmov %vm7068_vm1 }
 0x1a3   : > { %4904 = vmatpush3.bf16.msra.mxu1 %v4901_v36  ;;  %4480 = vmatprep.mubr.f32.mxu1 %v6093_v8  ;;  %v3589_v8 = vld [vmem:[%s6887_s4 + $0x440] sm:$0xff]  ;;  %vm7077_vm7 = vmmov %vm7068_vm1 }
 0x1a4   : > { %4906 = vmatprep.subr.bf16.mxu1 %v4905_v17  ;;  %vm7078_vm9 = vmmov %vm7068_vm1 }
 0x1a5   : > { %vm7079_vm10 = vmmov %vm7068_vm1 }
 0x1a6   : > { %4481 = vmatmul.mubr.f32.gmra.mrb[2].mxu1 %v6142_v59  ;;  %v4917_v59 = vpack.c.bf16 %v3590_v3, %v3589_v8  ;;  %vm7080_vm12 = vmmov %vm7068_vm1 }
 0x1a7   : > { %4908 = vmatpush3.bf16.msra.mxu1 %v4905_v17  ;;  %4483 = vmatprep.mubr.f32.mxu1 %v6174_v4  ;;  %v3591_v4 = vld [vmem:[%s6887_s4 + $0x450] sm:$0xff]  ;;  %vm7081_vm0 = vmmov %vm7068_vm1 }
 0x1a8   : > { %4910 = vmatprep.subr.bf16.mxu1 %v4909_v10 }
 0x1aa   : > { %4484 = vmatmul.mubr.f32.gmra.mrb[4].mxu1 %v6210_v27  ;;  %v4921_v27 = vpack.c.bf16 %v3592_v28, %v3591_v4 }
 0x1ab   : > { %4912 = vmatpush3.bf16.msra.mxu1 %v4909_v10  ;;  %4486 = vmatprep.mubr.f32.mxu1 %v7060_v57 }
 0x1ac   : > { %4914 = vmatprep.subr.bf16.mxu1 %v4913_v33 }
 0x1ae   : > { %4487 = vmatmul.mubr.f32.gmra.mrb[6].mxu1 %v7061_v41 }
 0x1af   : > { %4916 = vmatpush3.bf16.msra.mxu1 %v4913_v33  ;;  %4489 = vmatprep.mubr.f32.mxu1 %v6272_v50  ;;  %v3595_v50 = vld [vmem:[%s6887_s4 + $0x470] sm:$0xff] }
 0x1b0   : > { %4918 = vmatprep.subr.bf16.mxu1 %v4917_v59 }
 0x1b2   : > { %4490 = vmatmul.mubr.f32.gmra.mrb[8].mxu1 %v6302_v39  ;;  %v4929_v39 = vpack.c.bf16 %v3596_v43, %v3595_v50 }
 0x1b3   : > { %4920 = vmatpush3.bf16.msra.mxu1 %v4917_v59  ;;  %4492 = vmatprep.mubr.f32.mxu1 %v6306_v62  ;;  %v7062_v62 = vld [vmem:[#allocation19_spill] sm:$0xff] }
 0x1b4   : > { %4922 = vmatprep.subr.bf16.mxu1 %v4921_v27 }
 0x1b6   : > { %4493 = vmatmul.mubr.f32.gmra.mrb[10].mxu1 %v6322_v1  ;;  %v2987_v1 = vld [vmem:[%s6889_s6] sm:$0xff] }
 0x1b7   : > { %4924 = vmatpush3.bf16.msra.mxu1 %v4921_v27  ;;  %4495 = vmatprep.mubr.f32.mxu1 %v6335_v49  ;;  %v2988_v49 = vld [vmem:[%s6889_s6 + $0x8] sm:$0xff] }
 0x1b8   : > { %4926 = vmatprep.subr.bf16.mxu1 %v4925_v9 }
 0x1ba   : > { %4496 = vmatmul.mubr.f32.gmra.mrb[12].mxu1 %v6343_v11  ;;  %v2989_v11 = vld [vmem:[%s6889_s6 + $0x10] sm:$0xff] }
 0x1bb   : > { %4928 = vmatpush3.bf16.msra.mxu1 %v4925_v9  ;;  %4498 = vmatprep.mubr.f32.mxu1 %v7062_v62 }
 0x1bc   : > { %4930 = vmatprep.subr.bf16.mxu1 %v4929_v39 }
 0x1be   : > { %4499 = vmatmul.mubr.f32.gmra.mrb[14].mxu1 %v7063_v53 }
 0x1bf   : > { %4932 = vmatpush3.bf16.msra.mxu1 %v4929_v39  ;;  %4533 = vmatprep.mubr.f32.mxu1 %v6356_v44  ;;  %v4933_v44 = vpack.c.bf16 %v2988_v49, %v2987_v1 }
 0x1c1   : > { %4934 = vmatprep.subr.bf16.mxu0 %v4933_v44 }
 0x1c2   : > { %4534 = vmatmul.mubr.f32.vlgmr.msra.gmra.mrb[0].mxu1 %v6371_v6  ;;  %v2990_v6 = vld [vmem:[%s6889_s6 + $0x18] sm:$0xff]  ;;  %4936 = vmatpush3.bf16.msra.mxu0 %v4933_v44 }
 0x1c3   : > { %4536 = vmatprep.mubr.f32.mxu1 %v6375_v30  ;;  %v4937_v30 = vpack.c.bf16 %v2990_v6, %v2989_v11 }
 0x1c5   : > { %4938 = vmatprep.subr.bf16.mxu0 %v4937_v30 }
 0x1c6   : > { %4537 = vmatmul.mubr.f32.gmra.mrb[2].mxu1 %v6390_v63  ;;  %v2991_v63 = vld [vmem:[%s6889_s6 + $0x20] sm:$0xff]  ;;  %4940 = vmatpush3.bf16.msra.mxu0 %v4937_v30 }
 0x1c7   : > { %4539 = vmatprep.mubr.f32.mxu1 %v6394_v14  ;;  %v2992_v14 = vld [vmem:[%s6889_s6 + $0x28] sm:$0xff] }
 0x1ca   : > { %4540 = vmatmul.mubr.f32.gmra.mrb[4].mxu1 %v6409_v15  ;;  %v4941_v15 = vpack.c.bf16 %v2992_v14, %v2991_v63 }
 0x1cb   : > { %4542 = vmatprep.mubr.f32.mxu1 %v6413_v54  ;;  %v2993_v54 = vld [vmem:[%s6889_s6 + $0x30] sm:$0xff] }
 0x1cc   : > { %4942 = vmatprep.subr.bf16.mxu0 %v4941_v15 }
 0x1cd   : > { %4944 = vmatpush3.bf16.msra.mxu0 %v4941_v15 }
 0x1ce   : > { %4543 = vmatmul.mubr.f32.gmra.mrb[6].mxu1 %v6428_v22  ;;  %v2994_v22 = vld [vmem:[%s6889_s6 + $0x38] sm:$0xff] }
 0x1cf   : > { %4545 = vmatprep.mubr.f32.mxu1 %v6432_v60  ;;  %v4945_v52 = vpack.c.bf16 %v2994_v22, %v2993_v54  ;;  %v2995_v60 = vld [vmem:[%s6889_s6 + $0x40] sm:$0xff] }
 0x1d1   : > { %4946 = vmatprep.subr.bf16.mxu0 %v4945_v52 }
 0x1d2   : > { %4546 = vmatmul.mubr.f32.gmra.mrb[8].mxu1 %v6447_v34  ;;  %v2996_v34 = vld [vmem:[%s6889_s6 + $0x48] sm:$0xff]  ;;  %4948 = vmatpush3.bf16.msra.mxu0 %v4945_v52 }
 0x1d3   : > { %4548 = vmatprep.mubr.f32.mxu1 %v6451_v24  ;;  %v4949_v37 = vpack.c.bf16 %v2996_v34, %v2995_v60  ;;  %v2997_v24 = vld [vmem:[%s6889_s6 + $0x50] sm:$0xff] }
 0x1d5   : > { %4950 = vmatprep.subr.bf16.mxu0 %v4949_v37 }
 0x1d6   : > { %4549 = vmatmul.mubr.f32.gmra.mrb[10].mxu1 %v6465_v32  ;;  %v2998_v32 = vld [vmem:[%s6889_s6 + $0x58] sm:$0xff]  ;;  %4952 = vmatpush3.bf16.msra.mxu0 %v4949_v37 }
 0x1d7   : > { %4551 = vmatprep.mubr.f32.mxu1 %v6477_v31  ;;  %v4953_v45 = vpack.c.bf16 %v2998_v32, %v2997_v24  ;;  %v2999_v31 = vld [vmem:[%s6889_s6 + $0x60] sm:$0xff] }
 0x1d9   : > { %4954 = vmatprep.subr.bf16.mxu0 %v4953_v45 }
 0x1da   : > { %4552 = vmatmul.mubr.f32.gmra.mrb[12].mxu1 %v6481_v16  ;;  %4956 = vmatpush3.bf16.msra.mxu0 %v4953_v45  ;;  %v3000_v16 = vld [vmem:[%s6889_s6 + $0x68] sm:$0xff] }
 0x1db   : > { %4554 = vmatprep.mubr.f32.mxu1 %v7064_v56  ;;  %v4957_v0 = vpack.c.bf16 %v3000_v16, %v2999_v31 }
 0x1dd   : > { %4958 = vmatprep.subr.bf16.mxu0 %v4957_v0 }
 0x1de   : > { %4555 = vmatmul.mubr.f32.gmra.mrb[14].mxu1 %v7065_v51  ;;  %4960 = vmatpush3.bf16.msra.mxu0 %v4957_v0 }
 0x1df   : > { %4962 = vmatprep.subr.bf16.mxu0 %v4961_v42 }
 0x1e2   : > { %4964 = vmatpush3.bf16.msra.mxu0 %v4961_v42 }
 0x22f   : > { %v4199_v38 = vpop.f32.mrb[30].mxu0 }
 0x230   : > { %v1511_v47 = vpop.f32.mrb[31].mxu0 }
 0x233   : > { %v4202_v29 = vpop.f32.mrb[32].mxu0 }
 0x234   : > { %v1521_v55 = vpop.f32.mrb[33].mxu0 }
 0x237   : > { %v4205_v2 = vpop.f32.mrb[34].mxu0 }
 0x238   : > { %v1531_v40 = vpop.f32.mrb[35].mxu0 }
 0x23b   : > { %v4208_v5 = vpop.f32.mrb[36].mxu0 }
 0x23c   : > { %v1541_v19 = vpop.f32.mrb[37].mxu0 }
 0x23f   : > { %v4211_v36 = vpop.f32.mrb[38].mxu0 }
 0x240   : > { %v1551_v58 = vpop.f32.mrb[39].mxu0 }
 0x243   : > { %v4214_v35 = vpop.f32.mrb[40].mxu0 }
 0x244   : > { %v1561_v23 = vpop.f32.mrb[41].mxu0 }
 0x247   : > { %v4217_v21 = vpop.f32.mrb[42].mxu0 }
 0x248   : > { %v6704_v25 = vpop.f32.mrb[43].mxu0 }
 0x24b   : > { %v6706_v26 = vpop.f32.mrb[44].mxu0 }
 0x24c   : > { %v6708_v17 = vpop.f32.mrb[45].mxu0 }
 0x295   : > { %v4535_v7 = vpop.f32.mrb[0].mxu1 }
 0x296   : > { %v4965_v10 = vadd.f32 %v4535_v7, %v4199_v38  ;;  %v2805_v46 = vpop.f32.mrb[1].mxu1 }
 0x297   : > { %v4966_v20 = vadd.f32 %v2805_v46, %v1511_v47 }
 0x298   : > { %v2956_v33 = vadd.f32 %v4965_v10, %v6713_v61 }
 0x299   : > { %v2955_v8 = vadd.f32 %v4966_v20, %v6713_v61  ;;  %v4538_v3 = vpop.f32.mrb[2].mxu1 }
 0x29a   : > { %v4967_v57 = vadd.f32 %v4538_v3, %v4202_v29  ;;  %v2815_v59 = vpop.f32.mrb[3].mxu1  ;;  %v2972_v41 = vmax.f32 %v2956_v33, 0.0  ;;  %v5137_v33 = vld [vmem:[%s5323_s27 + $0x28] sm:$0xff] }
 0x29b   : > { %v2971_v4 = vmax.f32 %v2955_v8, 0.0  ;;  %v4968_v28 = vadd.f32 %v2815_v59, %v1521_v55  ;;  %v5138_v8 = vld [vmem:[%s5323_s27 + $0x18] sm:$0xff] }
 0x29c   : > { %v2958_v27 = vadd.f32 %v4967_v57, %v6713_v61  ;;  %v3179_v3 = vrot.slane %v5138_v8, 1 }
 0x29d   : > { %v2957_v48 = vadd.f32 %v4968_v28, %v6713_v61  ;;  %v4541_v18 = vpop.f32.mrb[4].mxu1  ;;  %4589 = vmatprep.mubr.f32.mxu0 %v2971_v4  ;;  %v5140_v4 = vld [vmem:[%s5323_s27 + $0x40] sm:$0xff] }
 0x29e   : > { %v4969_v9 = vadd.f32 %v4541_v18, %v4205_v2  ;;  %v2825_v50 = vpop.f32.mrb[5].mxu1  ;;  %4590 = vmatmul.mubr.f32.vlgmr.msra.gmra.mrb[46].mxu0 %v2972_v41  ;;  %v2974_v62 = vmax.f32 %v2958_v27, 0.0  ;;  %v3187_v28 = vrot.slane %v5140_v4, 1  ;;  %v5141_v41 = vld [vmem:[%s5323_s27 + $0x30] sm:$0xff] }
 0x29f   : > { %v2973_v43 = vmax.f32 %v2957_v48, 0.0  ;;  %v4970_v39 = vadd.f32 %v2825_v50, %v1531_v40  ;;  %v3184_v27 = vrot.slane %v5141_v41, 1  ;;  %v5142_v18 = vld [vmem:[%s5323_s27 + $0x50] sm:$0xff]  ;;  %v5143_v50 = vld [vmem:[%s5323_s27 + $0x58] sm:$0xff] }
 0x2a0   : > { %v2960_v53 = vadd.f32 %v4969_v9, %v6713_v61  ;;  %v3190_v9 = vrot.slane %v5142_v18, 1 }
 0x2a1   : > { %v2959_v1 = vadd.f32 %v4970_v39, %v6713_v61  ;;  %v4544_v49 = vpop.f32.mrb[6].mxu1  ;;  %4592 = vmatprep.mubr.f32.mxu0 %v2973_v43  ;;  %v3192_v43 = vrot.slane %v5143_v50, 1 }
 0x2a2   : > { %v4971_v11 = vadd.f32 %v4544_v49, %v4208_v5  ;;  %v2835_v44 = vpop.f32.mrb[7].mxu1  ;;  %4593 = vmatmul.mubr.f32.gmra.mrb[48].mxu0 %v2974_v62  ;;  %v2976_v63 = vmax.f32 %v2960_v53, 0.0  ;;  %v5144_v62 = vld [vmem:[%s5323_s27 + $0x48] sm:$0xff] }
 0x2a3   : > { %v2975_v6 = vmax.f32 %v2959_v1, 0.0  ;;  %v4972_v30 = vadd.f32 %v2835_v44, %v1541_v19  ;;  %v3189_v53 = vrot.slane %v5144_v62, 1  ;;  %v5145_v49 = vld [vmem:[%s5323_s27 + $0x68] sm:$0xff]  ;;  %v5146_v44 = vld [vmem:[%s5323_s27 + $0x70] sm:$0xff] }
 0x2a4   : > { %v2962_v14 = vadd.f32 %v4971_v11, %v6713_v61  ;;  %v3195_v11 = vrot.slane %v5145_v49, 1 }
 0x2a5   : > { %v2961_v15 = vadd.f32 %v4972_v30, %v6713_v61  ;;  %v4547_v54 = vpop.f32.mrb[8].mxu1  ;;  %4595 = vmatprep.mubr.f32.mxu0 %v2975_v6  ;;  %v3197_v6 = vrot.slane %v5146_v44, 1  ;;  %v6756_v30 = vsel %vm7070_vm6, %v3190_v9, %v3192_v43 }
 0x2a6   : > { %v4973_v22 = vadd.f32 %v4547_v54, %v4211_v36  ;;  %v2845_v52 = vpop.f32.mrb[9].mxu1  ;;  %4596 = vmatmul.mubr.f32.gmra.mrb[50].mxu0 %v2976_v63  ;;  %v2978_v37 = vmax.f32 %v2962_v14, 0.0  ;;  %v5147_v63 = vld [vmem:[%s5323_s27 + $0x60] sm:$0xff] }
 0x2a7   : > { %v2977_v60 = vmax.f32 %v2961_v15, 0.0  ;;  %v4974_v34 = vadd.f32 %v2845_v52, %v1551_v58  ;;  %v3194_v14 = vrot.slane %v5147_v63, 1  ;;  %v6760_v15 = vsel %vm7071_vm2, %v3189_v53, %v3190_v9  ;;  %v5148_v54 = vld [vmem:[%s5323_s27 + $0x80] sm:$0xff]  ;;  %v5149_v52 = vld [vmem:[%s5323_s27 + $0x88] sm:$0xff] }
 0x2a8   : > { %v2964_v24 = vadd.f32 %v4973_v22, %v6713_v61  ;;  %v3200_v22 = vrot.slane %v5148_v54, 1 }
 0x2a9   : > { %v2963_v32 = vadd.f32 %v4974_v34, %v6713_v61  ;;  %v4550_v56 = vpop.f32.mrb[10].mxu1  ;;  %4598 = vmatprep.mubr.f32.mxu0 %v2977_v60  ;;  %v3202_v60 = vrot.slane %v5149_v52, 1  ;;  %v6765_v34 = vsel %vm7072_vm5, %v3195_v11, %v3197_v6 }
 0x2aa   : > { %v4975_v45 = vadd.f32 %v4550_v56, %v4214_v35  ;;  %v2855_v51 = vpop.f32.mrb[11].mxu1  ;;  %4599 = vmatmul.mubr.f32.gmra.mrb[52].mxu0 %v2978_v37  ;;  %v2980_v0 = vmax.f32 %v2964_v24, 0.0  ;;  %v5150_v37 = vld [vmem:[%s5323_s27 + $0x78] sm:$0xff] }
 0x2ab   : > { %v2979_v31 = vmax.f32 %v2963_v32, 0.0  ;;  %v4976_v16 = vadd.f32 %v2855_v51, %v1561_v23  ;;  %v3199_v24 = vrot.slane %v5150_v37, 1  ;;  %v6769_v32 = vsel %vm7073_vm3, %v3194_v14, %v3195_v11  ;;  %v5151_v56 = vld [vmem:[%s5323_s27 + $0x98] sm:$0xff]  ;;  %v5152_v51 = vld [vmem:[%s5323_s27 + $0xa0] sm:$0xff] }
 0x2ac   : > { %v2966_v12 = vadd.f32 %v4975_v45, %v6713_v61  ;;  %v3205_v45 = vrot.slane %v5151_v56, 1 }
 0x2ad   : > { %v2965_v13 = vadd.f32 %v4976_v16, %v6713_v61  ;;  %v4553_v42 = vpop.f32.mrb[12].mxu1  ;;  %4601 = vmatprep.mubr.f32.mxu0 %v2979_v31  ;;  %v3207_v31 = vrot.slane %v5152_v51, 1  ;;  %v6774_v16 = vsel %vm7074_vm4, %v3200_v22, %v3202_v60 }
 0x2ae   : > { %v4977_v38 = vadd.f32 %v4553_v42, %v4217_v21  ;;  %v2865_v47 = vpop.f32.mrb[13].mxu1  ;;  %4602 = vmatmul.mubr.f32.gmra.mrb[54].mxu0 %v2980_v0  ;;  %v2982_v2 = vmax.f32 %v2966_v12, 0.0  ;;  %v5153_v0 = vld [vmem:[%s5323_s27 + $0x90] sm:$0xff] }
 0x2af   : > { %v2981_v29 = vmax.f32 %v2965_v13, 0.0  ;;  %v4978_v55 = vadd.f32 %v2865_v47, %v6704_v25  ;;  %v3204_v12 = vrot.slane %v5153_v0, 1  ;;  %v6778_v13 = vsel %vm7075_vm14, %v3199_v24, %v3200_v22  ;;  %v5154_v42 = vld [vmem:[%s5323_s27 + $0xb0] sm:$0xff]  ;;  %v5155_v47 = vld [vmem:[%s5323_s27 + $0xb8] sm:$0xff] }
 0x2b0   : > { %v2968_v40 = vadd.f32 %v4977_v38, %v6713_v61  ;;  %v3210_v38 = vrot.slane %v5154_v42, 1 }
 0x2b1   : > { %v2967_v5 = vadd.f32 %v4978_v55, %v6713_v61  ;;  %v4556_v19 = vpop.f32.mrb[14].mxu1  ;;  %4604 = vmatprep.mubr.f32.mxu0 %v2981_v29  ;;  %v3212_v29 = vrot.slane %v5155_v47, 1  ;;  %v6783_v55 = vsel %vm7076_vm13, %v3205_v45, %v3207_v31 }
 0x2b2   : > { %v4979_v36 = vadd.f32 %v4556_v19, %v6706_v26  ;;  %v2875_v58 = vpop.f32.mrb[15].mxu1  ;;  %4605 = vmatmul.mubr.f32.gmra.mrb[56].mxu0 %v2982_v2  ;;  %v2984_v21 = vmax.f32 %v2968_v40, 0.0  ;;  %v5136_v26 = vld [vmem:[%s5323_s27 + $0x20] sm:$0xff]  ;;  %v5156_v2 = vld [vmem:[%s5323_s27 + $0xa8] sm:$0xff] }
 0x2b3   : > { %v2983_v35 = vmax.f32 %v2967_v5, 0.0  ;;  %v4980_v23 = vadd.f32 %v2875_v58, %v6708_v17  ;;  %v3180_v20 = vrot.slane %v5136_v26, 1  ;;  %v3182_v17 = vrot.slane %v5137_v33, 1 }
 0x2b4   : > { %v2970_v25 = vadd.f32 %v4979_v36, %v6713_v61  ;;  %v3209_v40 = vrot.slane %v5156_v2, 1  ;;  %v6787_v5 = vsel %vm7077_vm7, %v3204_v12, %v3205_v45  ;;  %v6790_v19 = vsel %vm7078_vm9, %v3210_v38, %v3212_v29  ;;  %v5157_v36 = vld [vmem:[%s5438_s12] sm:$0xff]  ;;  %v5159_v12 = vld [vmem:[%s5438_s12 + $0x10] sm:$0xff] }
 0x2b5   : > { %v2969_v7 = vadd.f32 %v4980_v23, %v6713_v61  ;;  %4607 = vmatprep.mubr.f32.mxu0 %v2983_v35  ;;  %v6738_v57 = vsel %vm7066_vm8, %v3180_v20, %v3182_v17  ;;  %v5139_v61 = vld [vmem:[%s5323_s27 + $0x38] sm:$0xff]  ;;  %v3181_v48 = vsel %vm7067_vm15, %v3179_v3, %v3180_v20  ;;  %v3214_v58 = vrot.slane %v5157_v36, 1  ;;  %v6794_v35 = vld [vmem:[%s5438_s12 + $0x8] sm:$0xff]  ;;  %s3416_s27 = sshll.u32 %s7097_s18, 1 }
 0x2b6   : > { %4608 = vmatmul.mubr.f32.gmra.mrb[58].mxu0 %v2984_v21  ;;  %v2986_v46 = vmax.f32 %v2970_v25, 0.0  ;;  %v3185_v59 = vrot.slane %v5139_v61, 1  ;;  %v3215_v23 = vrot.slane %v6794_v35, 1  ;;  %v6798_v21 = vsel %vm7079_vm10, %v3209_v40, %v3210_v38  ;;  %s399_s16 = sadd.s32 %s3417_s15, %s3416_s27 }
 0x2b7   : > { %v2985_v10 = vmax.f32 %v2969_v7, 0.0  ;;  %v6811_v7 = vld [vmem:[%s6890_s7] ss:$0 sm:$0xff]  ;;  %s3418_s20 = sshll.u32 %s399_s16, 3  ;;  %v3217_v42 = vrot.slane %v5159_v12, 1 }
 0x2b8   : > { %v6747_v39 = vsel %vm7068_vm1, %v3185_v59, %v3187_v28  ;;  %v6751_v1 = vsel %vm7069_vm11, %v3184_v27, %v3185_v59  ;;  %v6803_v25 = vsel %vm7080_vm12, %v3214_v58, %v3215_v23  ;;  %s6819_s18 = scalar_lea.vmem %s6891_s8, %s3418_s20 }
 0x2b9   : > { %4610 = vmatprep.mubr.f32.mxu0 %v2985_v10 }
 0x2ba   : > { %4611 = vmatmul.mubr.f32.gmra.mrb[60].mxu0 %v2986_v46 }
 0x371   : > { %v4591_v10 = vpop.f32.mrb[46].mxu0 }
 0x372   : > { %v3082_v46 = vadd.f32 %v4591_v10, %v6811_v7  ;;  %v3076_v26 = vpop.f32.mrb[47].mxu0 }
 0x373   : > { %v3077_v20 = vadd.f32 %v6811_v7, %v3076_v26 }
 0x374   : > { %v3236_v33 = vadd.f32 %v6738_v57, %v3082_v46 }
 0x375   : > { %v3235_v17 = vadd.f32 %v3181_v48, %v3077_v20  ;;  %v4594_v8 = vpop.f32.mrb[48].mxu0 }
 0x376   : > { %v3252_v3 = vmax.f32 %v3236_v33, 0.0  ;;  %v3092_v61 = vadd.f32 %v4594_v8, %v6811_v7  ;;  %v3086_v59 = vpop.f32.mrb[49].mxu0 }
 0x377   : > { %v3251_v4 = vmax.f32 %v3235_v17, 0.0  ;;  %v3087_v28 = vadd.f32 %v6811_v7, %v3086_v59 }
 0x378   : > { %3268 = vst [vmem:[%s6819_s18 + $0x8] sm:$0xff] %v3252_v3  ;;  %v3238_v57 = vadd.f32 %v6747_v39, %v3092_v61 }
 0x379   : > { %3267 = vst [vmem:[%s6819_s18] sm:$0xff] %v3251_v4  ;;  %v3237_v41 = vadd.f32 %v6751_v1, %v3087_v28  ;;  %v4597_v27 = vpop.f32.mrb[50].mxu0 }
 0x37a   : > { %v3254_v18 = vmax.f32 %v3238_v57, 0.0  ;;  %v3102_v48 = vadd.f32 %v4597_v27, %v6811_v7  ;;  %v3096_v9 = vpop.f32.mrb[51].mxu0 }
 0x37b   : > { %v3253_v50 = vmax.f32 %v3237_v41, 0.0  ;;  %v3097_v43 = vadd.f32 %v6811_v7, %v3096_v9 }
 0x37c   : > { %3270 = vst [vmem:[%s6819_s18 + $0x18] sm:$0xff] %v3254_v18  ;;  %v3240_v62 = vadd.f32 %v6756_v30, %v3102_v48 }
 0x37d   : > { %3269 = vst [vmem:[%s6819_s18 + $0x10] sm:$0xff] %v3253_v50  ;;  %v3239_v53 = vadd.f32 %v6760_v15, %v3097_v43  ;;  %v4600_v39 = vpop.f32.mrb[52].mxu0 }
 0x37e   : > { %v3256_v49 = vmax.f32 %v3240_v62, 0.0  ;;  %v3112_v1 = vadd.f32 %v4600_v39, %v6811_v7  ;;  %v3106_v11 = vpop.f32.mrb[53].mxu0 }
 0x37f   : > { %v3255_v44 = vmax.f32 %v3239_v53, 0.0  ;;  %v3107_v6 = vadd.f32 %v6811_v7, %v3106_v11 }
 0x380   : > { %3272 = vst [vmem:[%s6819_s18 + $0x28] sm:$0xff] %v3256_v49  ;;  %v3242_v63 = vadd.f32 %v6765_v34, %v3112_v1 }
 0x381   : > { %3271 = vst [vmem:[%s6819_s18 + $0x20] sm:$0xff] %v3255_v44  ;;  %v3241_v14 = vadd.f32 %v6769_v32, %v3107_v6  ;;  %v4603_v30 = vpop.f32.mrb[54].mxu0 }
 0x382   : > { %v3258_v54 = vmax.f32 %v3242_v63, 0.0  ;;  %v3122_v15 = vadd.f32 %v4603_v30, %v6811_v7  ;;  %v3116_v22 = vpop.f32.mrb[55].mxu0 }
 0x383   : > { %v3257_v52 = vmax.f32 %v3241_v14, 0.0  ;;  %v3117_v60 = vadd.f32 %v6811_v7, %v3116_v22 }
 0x384   : > { %3274 = vst [vmem:[%s6819_s18 + $0x38] sm:$0xff] %v3258_v54  ;;  %v3244_v37 = vadd.f32 %v6774_v16, %v3122_v15 }
 0x385   : > { %3273 = vst [vmem:[%s6819_s18 + $0x30] sm:$0xff] %v3257_v52  ;;  %v3243_v34 = vadd.f32 %v6778_v13, %v3117_v60  ;;  %v4606_v24 = vpop.f32.mrb[56].mxu0 }
 0x386   : > { %v3260_v56 = vmax.f32 %v3244_v37, 0.0  ;;  %v3132_v32 = vadd.f32 %v4606_v24, %v6811_v7  ;;  %v3126_v45 = vpop.f32.mrb[57].mxu0 }
 0x387   : > { %v3259_v51 = vmax.f32 %v3243_v34, 0.0  ;;  %v3127_v31 = vadd.f32 %v6811_v7, %v3126_v45 }
 0x388   : > { %3276 = vst [vmem:[%s6819_s18 + $0x48] sm:$0xff] %v3260_v56  ;;  %v3246_v0 = vadd.f32 %v6783_v55, %v3132_v32 }
 0x389   : > { %3275 = vst [vmem:[%s6819_s18 + $0x40] sm:$0xff] %v3259_v51  ;;  %v3245_v16 = vadd.f32 %v6787_v5, %v3127_v31  ;;  %v4609_v38 = vpop.f32.mrb[58].mxu0  ;;  %v3218_v5 = vsel %vm7081_vm0, %v3215_v23, %v3217_v42 }
 0x38a   : > { %v3262_v13 = vmax.f32 %v3246_v0, 0.0  ;;  %v3142_v47 = vadd.f32 %v4609_v38, %v6811_v7  ;;  %v3136_v29 = vpop.f32.mrb[59].mxu0 }
 0x38b   : > { %v3261_v2 = vmax.f32 %v3245_v16, 0.0  ;;  %v3137_v40 = vadd.f32 %v6811_v7, %v3136_v29 }
 0x38c   : > { %3278 = vst [vmem:[%s6819_s18 + $0x58] sm:$0xff] %v3262_v13  ;;  %v3248_v36 = vadd.f32 %v6790_v19, %v3142_v47 }
 0x38d   : > { %3277 = vst [vmem:[%s6819_s18 + $0x50] sm:$0xff] %v3261_v2  ;;  %v3247_v55 = vadd.f32 %v6798_v21, %v3137_v40  ;;  %v4612_v58 = vpop.f32.mrb[60].mxu0 }
 0x38e   : > { %v3264_v10 = vmax.f32 %v3248_v36, 0.0  ;;  %v3152_v46 = vadd.f32 %v4612_v58, %v6811_v7  ;;  %v3146_v26 = vpop.f32.mrb[61].mxu0 }
 0x38f   : > { %v3263_v20 = vmax.f32 %v3247_v55, 0.0  ;;  %v3147_v33 = vadd.f32 %v6811_v7, %v3146_v26 }
 0x390   : > { %3280 = vst [vmem:[%s6819_s18 + $0x68] sm:$0xff] %v3264_v10  ;;  %v3250_v17 = vadd.f32 %v3218_v5, %v3152_v46 }
 0x391   : > { %3279 = vst [vmem:[%s6819_s18 + $0x60] sm:$0xff] %v3263_v20  ;;  %v3249_v19 = vadd.f32 %v6803_v25, %v3147_v33 }
 0x392   : > { %v3266_v8 = vmax.f32 %v3250_v17, 0.0 }
 0x393   : > { %v3265_v3 = vmax.f32 %v3249_v19, 0.0 }
 0x394   : > { %3282 = vst [vmem:[%s6819_s18 + $0x78] sm:$0xff] %v3266_v8 }
 0x395   : > { %3281 = vst [vmem:[%s6819_s18 + $0x70] sm:$0xff] %v3265_v3 }
 0x396 PF: > { %s18_s9 = sadd.s32 1, %s5198_s9   ;;  %s7082_s27 = smov %s5190_s29 }
 0x397   : > { %p15_p9 = scmp.ge.s32.totalorder %s18_s9, 6   ;;  %s7083_s28 = smov %s5194_s30 }
 0x398   : > { %s7084_s29 = smov %s7087_s10  ;;  %s7085_s30 = smov %s7091_s11 }
 0x399   :  { %17 = sbr.rel (!%p15_p9) target bundleno = 3 (0x3), region = 94 }

</bundles_post_ra>
